<compile_context>
chip_gen: v7x
topology: tpu7x:2x2x1
jax: 0.10.0
libtpu: 0.0.40
codegen_flags: <defaults>
</compile_context>

<pallas_src>
import jax
import jax.numpy as jnp
from jax.experimental import pallas as pl
from jax.experimental.pallas import tpu as pltpu


_VMEM = pl.BlockSpec(memory_space=pltpu.MemorySpace.VMEM)


def _fc1_gi_kernel(x_ref, w1_ref, b1_ref, wih_ref, bgi_ref, gi_ref):
    """Batched, non-recurrent pass over all B*T rows.

    x_ref  : (B*T, F)
    gi_ref : (B*T, 3H)  = relu(x@W1+b1) @ W_ih + b_gi   (b_gi has r/z hidden
                          biases folded in; n's hidden bias is applied later)
    """
    a1 = jnp.maximum(
        jnp.dot(x_ref[...], w1_ref[...], preferred_element_type=jnp.float32)
        + b1_ref[...], 0.0)
    gi_ref[...] = (jnp.dot(a1, wih_ref[...], preferred_element_type=jnp.float32)
                   + bgi_ref[...]).astype(gi_ref.dtype)


def _gru_kernel(gir_ref, giz_ref, gin_ref,      # (T, B, H) precomputed input-side gates
                h0_ref,                         # (B, H)
                whr_ref, whz_ref, whn_ref,      # (H, H) hidden-side weights per gate
                bhn_ref,                        # (1, H) hidden bias of the n gate
                x_ref, h_ref):                  # outs: (T, B, H), (B, H)
    """Serial GRU recurrence.  One pallas_call, time loop fully unrolled."""
    t_steps = gir_ref.shape[0]

    # Hidden-side weights loaded once; they stay resident across all steps.
    whr = whr_ref[...]
    whz = whz_ref[...]
    whn = whn_ref[...]
    bhn = bhn_ref[...]

    def step(t, h):
        r = jax.nn.sigmoid(
            gir_ref[t] + jnp.dot(h, whr, preferred_element_type=jnp.float32))
        z = jax.nn.sigmoid(
            giz_ref[t] + jnp.dot(h, whz, preferred_element_type=jnp.float32))
        n = jnp.tanh(
            gin_ref[t]
            + r * (jnp.dot(h, whn, preferred_element_type=jnp.float32) + bhn))
        h_new = n + z * (h - n)                 # == (1-z)*n + z*h
        x_ref[t] = h_new.astype(x_ref.dtype)    # VMEM store; HBM flush happens once
        return h_new

    h_last = jax.lax.fori_loop(0, t_steps, step,
                               h0_ref[...].astype(jnp.float32), unroll=True)
    h_ref[...] = h_last.astype(h_ref.dtype)


def _fc2_kernel(x_ref, w2_ref, b2_ref, q_ref):
    """Batched fc2 over all B*T GRU outputs (hoisted out of the recurrence)."""
    q_ref[...] = (jnp.dot(x_ref[...], w2_ref[...], preferred_element_type=jnp.float32)
                  + b2_ref[...]).astype(q_ref.dtype)


@jax.jit
def rnn_fast_agent_forward(inputs, hidden_state, params):
    """inputs: (B, T, F); hidden_state: (B, H).  Returns (q, h, x) like PyTorch."""
    B, T, F = inputs.shape
    H = params["w1"].shape[1]
    A = params["w2"].shape[1]

    x_bt = inputs.reshape(B * T, F).astype(jnp.float32)       # batch-major rows
    h0 = hidden_state.reshape(B, H).astype(jnp.float32)

    # Fold the r/z hidden biases into the input-side bias (n's hidden bias must
    # stay inside the r*(...) term of the GRU cell).
    b_hh = params["b_hh"]
    b_gi = params["b_ih"] + jnp.concatenate(
        [b_hh[:, :H], b_hh[:, H:2 * H], jnp.zeros_like(b_hh[:, 2 * H:])], axis=1)
    b_hn = b_hh[:, 2 * H:]

    # ---- pass 1: batched fc1 + ReLU + input-side GRU matmul ----------------
    gi = pl.pallas_call(
        _fc1_gi_kernel,
        out_shape=jax.ShapeDtypeStruct((B * T, 3 * H), jnp.float32),
        in_specs=[_VMEM] * 5,
        out_specs=_VMEM,
    )(x_bt, params["w1"], params["b1"], params["w_ih"], b_gi)

    # Time-major, gate-split views for the recurrent kernel (XLA-side layout
    # plumbing, outside the serial chain).
    gi_tm = gi.reshape(B, T, 3 * H).transpose(1, 0, 2)          # (T, B, 3H)
    gi_r, gi_z, gi_n = gi_tm[..., :H], gi_tm[..., H:2 * H], gi_tm[..., 2 * H:]
    w_hh = params["w_hh"]
    whr, whz, whn = w_hh[:, :H], w_hh[:, H:2 * H], w_hh[:, 2 * H:]

    # ---- pass 2: serial GRU recurrence (single pallas_call, unrolled) ------
    x_tm, h_out = pl.pallas_call(
        _gru_kernel,
        out_shape=(jax.ShapeDtypeStruct((T, B, H), jnp.float32),
                   jax.ShapeDtypeStruct((B, H), jnp.float32)),
        in_specs=[_VMEM] * 8,
        out_specs=(_VMEM, _VMEM),
    )(gi_r, gi_z, gi_n, h0, whr, whz, whn, b_hn)

    # Batch-major flat GRU outputs (also the PyTorch return value `x`).
    x_flat = x_tm.transpose(1, 0, 2).reshape(B * T, H)

    # ---- pass 3: batched fc2 ------------------------------------------------
    q2 = pl.pallas_call(
        _fc2_kernel,
        out_shape=jax.ShapeDtypeStruct((B * T, A), jnp.float32),
        in_specs=[_VMEM] * 3,
        out_specs=_VMEM,
    )(x_flat, params["w2"], params["b2"])

    q = q2.reshape(B, T, A)
    h = h_out.reshape(1, B, H)
    return q, h, x_flat


def _reference_forward(inputs, hidden_state, params):
    """Pure-JAX reference replicating PyTorch RNNFastAgent.forward."""
    B, T, F = inputs.shape
    H = params["w1"].shape[1]
    a1 = jax.nn.relu(inputs.reshape(B * T, F) @ params["w1"] + params["b1"][0])
    a1 = a1.reshape(B, T, H)

    def cell(h, x_t):
        gi = x_t @ params["w_ih"] + params["b_ih"][0]
        gh = h @ params["w_hh"] + params["b_hh"][0]
        i_r, i_z, i_n = gi[:, :H], gi[:, H:2 * H], gi[:, 2 * H:]
        h_r, h_z, h_n = gh[:, :H], gh[:, H:2 * H], gh[:, 2 * H:]
        r = jax.nn.sigmoid(i_r + h_r)
        z = jax.nn.sigmoid(i_z + h_z)
        n = jnp.tanh(i_n + r * h_n)
        h_new = (1.0 - z) * n + z * h
        return h_new, h_new

    h_last, outs = jax.lax.scan(cell, hidden_state.reshape(B, H),
                                jnp.transpose(a1, (1, 0, 2)))
    x = jnp.transpose(outs, (1, 0, 2)).reshape(B * T, H)
    q = (x @ params["w2"] + params["b2"][0]).reshape(B, T, -1)
    return q, h_last.reshape(1, B, H), x


def _make_params(key, num_feat, hidden, n_actions):
    ks = jax.random.split(key, 10)
    u = lambda k, shape, s: jax.random.uniform(k, shape, jnp.float32, -s, s)
    return {
        # fc1: PyTorch weight (H, F) -> stored transposed (F, H)
        "w1": u(ks[0], (num_feat, hidden), 1.0 / jnp.sqrt(num_feat)),
        "b1": u(ks[1], (1, hidden), 1.0 / jnp.sqrt(num_feat)),
        # GRU: weight_ih_l0 (3H, H) -> transposed (H, 3H); gate order [r, z, n]
        "w_ih": u(ks[2], (hidden, 3 * hidden), 1.0 / jnp.sqrt(hidden)),
        "w_hh": u(ks[3], (hidden, 3 * hidden), 1.0 / jnp.sqrt(hidden)),
        "b_ih": u(ks[4], (1, 3 * hidden), 1.0 / jnp.sqrt(hidden)),
        "b_hh": u(ks[5], (1, 3 * hidden), 1.0 / jnp.sqrt(hidden)),
        # fc2: PyTorch weight (A, H) -> transposed (H, A)
        "w2": u(ks[6], (hidden, n_actions), 1.0 / jnp.sqrt(hidden)),
        "b2": u(ks[7], (1, n_actions), 1.0 / jnp.sqrt(hidden)),
    }


if __name__ == "__main__":
    B, T, F, H, A = 2, 8, 16, 32, 5   # batch, episode length, features, hidden, actions

    key = jax.random.PRNGKey(0)
    k_params, k_in = jax.random.split(key)
    params = _make_params(k_params, F, H, A)

    inputs = jax.random.normal(k_in, (B, T, F), jnp.float32)
    hidden_state = jnp.zeros((B, H), jnp.float32)   # == init_hidden() expanded to batch

    q, h, x = rnn_fast_agent_forward(inputs, hidden_state, params)
    jax.block_until_ready((q, h, x))

    q_ref, h_ref, x_ref = _reference_forward(inputs, hidden_state, params)
    assert q.shape == (B, T, A) and h.shape == (1, B, H) and x.shape == (B * T, H)
    assert jnp.allclose(q, q_ref, atol=1e-5, rtol=1e-5)
    assert jnp.allclose(h, h_ref, atol=1e-5, rtol=1e-5)
    assert jnp.allclose(x, x_ref, atol=1e-5, rtol=1e-5)

    print("KERNEL_OK")
</pallas_src>

<mosaic_0001>
module attributes {stable_mosaic.version = 11 : i64} {
  func.func @_fc1_gi_kernel(%arg0: memref<16x16xf32, #tpu.memory_space<vmem>>, %arg1: memref<16x32xf32, #tpu.memory_space<vmem>>, %arg2: memref<1x32xf32, #tpu.memory_space<vmem>>, %arg3: memref<32x96xf32, #tpu.memory_space<vmem>>, %arg4: memref<1x96xf32, #tpu.memory_space<vmem>>, %arg5: memref<16x96xf32, #tpu.memory_space<vmem>>) attributes {dimension_semantics = [], scalar_prefetch = 0 : i64, scratch_operands = 0 : i64, tpu.core_type = #tpu.core_type<tc>} {
    %c0 = arith.constant 0 : index
    %c0_0 = arith.constant 0 : index
    %0 = vector.load %arg0[%c0, %c0_0] : memref<16x16xf32, #tpu.memory_space<vmem>>, vector<16x16xf32>
    %c0_1 = arith.constant 0 : index
    %c0_2 = arith.constant 0 : index
    %1 = vector.load %arg1[%c0_1, %c0_2] : memref<16x32xf32, #tpu.memory_space<vmem>>, vector<16x32xf32>
    %cst = arith.constant dense<0.000000e+00> : vector<16x32xf32>
    %2 = tpu.matmul %0, %1, %cst {dimension_numbers = #tpu.dot_dimension_numbers<[1], [0], [0], [1], [0, 0, 1, 1], [], []>} : vector<16x16xf32>, vector<16x32xf32>, vector<16x32xf32> -> vector<16x32xf32>
    %c0_3 = arith.constant 0 : index
    %c0_4 = arith.constant 0 : index
    %3 = vector.load %arg2[%c0_3, %c0_4] : memref<1x32xf32, #tpu.memory_space<vmem>>, vector<1x32xf32>
    %4 = vector.broadcast %3 : vector<1x32xf32> to vector<16x32xf32>
    %5 = arith.addf %2, %4 : vector<16x32xf32>
    %cst_5 = arith.constant 0.000000e+00 : f32
    %6 = vector.broadcast %cst_5 : f32 to vector<16x32xf32>
    %7 = arith.maximumf %5, %6 : vector<16x32xf32>
    %c0_6 = arith.constant 0 : index
    %c0_7 = arith.constant 0 : index
    %8 = vector.load %arg3[%c0_6, %c0_7] : memref<32x96xf32, #tpu.memory_space<vmem>>, vector<32x96xf32>
    %cst_8 = arith.constant dense<0.000000e+00> : vector<16x96xf32>
    %9 = tpu.matmul %7, %8, %cst_8 {dimension_numbers = #tpu.dot_dimension_numbers<[1], [0], [0], [1], [0, 0, 1, 1], [], []>} : vector<16x32xf32>, vector<32x96xf32>, vector<16x96xf32> -> vector<16x96xf32>
    %c0_9 = arith.constant 0 : index
    %c0_10 = arith.constant 0 : index
    %10 = vector.load %arg4[%c0_9, %c0_10] : memref<1x96xf32, #tpu.memory_space<vmem>>, vector<1x96xf32>
    %11 = vector.broadcast %10 : vector<1x96xf32> to vector<16x96xf32>
    %12 = arith.addf %9, %11 : vector<16x96xf32>
    %c0_11 = arith.constant 0 : index
    %c0_12 = arith.constant 0 : index
    %13 = vector.load %arg5[%c0_11, %c0_12] : memref<16x96xf32, #tpu.memory_space<vmem>>, vector<16x96xf32>
    tpu.vector_store %arg5[%c0_11, %c0_12], %12 {strides = array<i32>} : memref<16x96xf32, #tpu.memory_space<vmem>>, vector<16x96xf32>,
    return
  }
}

module attributes {stable_mosaic.version = 11 : i64} {
  func.func @_gru_kernel(%arg0: memref<8x2x32xf32, #tpu.memory_space<vmem>>, %arg1: memref<8x2x32xf32, #tpu.memory_space<vmem>>, %arg2: memref<8x2x32xf32, #tpu.memory_space<vmem>>, %arg3: memref<2x32xf32, #tpu.memory_space<vmem>>, %arg4: memref<32x32xf32, #tpu.memory_space<vmem>>, %arg5: memref<32x32xf32, #tpu.memory_space<vmem>>, %arg6: memref<32x32xf32, #tpu.memory_space<vmem>>, %arg7: memref<1x32xf32, #tpu.memory_space<vmem>>, %arg8: memref<8x2x32xf32, #tpu.memory_space<vmem>>, %arg9: memref<2x32xf32, #tpu.memory_space<vmem>>) attributes {dimension_semantics = [], scalar_prefetch = 0 : i64, scratch_operands = 0 : i64, tpu.core_type = #tpu.core_type<tc>} {
    %c0 = arith.constant 0 : index
    %c0_0 = arith.constant 0 : index
    %0 = vector.load %arg4[%c0, %c0_0] : memref<32x32xf32, #tpu.memory_space<vmem>>, vector<32x32xf32>
    %c0_1 = arith.constant 0 : index
    %c0_2 = arith.constant 0 : index
    %1 = vector.load %arg5[%c0_1, %c0_2] : memref<32x32xf32, #tpu.memory_space<vmem>>, vector<32x32xf32>
    %c0_3 = arith.constant 0 : index
    %c0_4 = arith.constant 0 : index
    %2 = vector.load %arg6[%c0_3, %c0_4] : memref<32x32xf32, #tpu.memory_space<vmem>>, vector<32x32xf32>
    %c0_5 = arith.constant 0 : index
    %c0_6 = arith.constant 0 : index
    %3 = vector.load %arg7[%c0_5, %c0_6] : memref<1x32xf32, #tpu.memory_space<vmem>>, vector<1x32xf32>
    %c0_7 = arith.constant 0 : index
    %c0_8 = arith.constant 0 : index
    %4 = vector.load %arg3[%c0_7, %c0_8] : memref<2x32xf32, #tpu.memory_space<vmem>>, vector<2x32xf32>
    %c0_i32 = arith.constant 0 : i32
    %5 = arith.index_cast %c0_i32 : i32 to index
    %c0_9 = arith.constant 0 : index
    %c0_10 = arith.constant 0 : index
    %6 = vector.load %arg0[%5, %c0_9, %c0_10] : memref<8x2x32xf32, #tpu.memory_space<vmem>>, vector<1x2x32xf32>
    %7 = vector.shape_cast %6 : vector<1x2x32xf32> to vector<2x32xf32>
    %cst = arith.constant dense<0.000000e+00> : vector<2x32xf32>
    %8 = tpu.matmul %4, %0, %cst {dimension_numbers = #tpu.dot_dimension_numbers<[1], [0], [0], [1], [0, 0, 1, 1], [], []>} : vector<2x32xf32>, vector<32x32xf32>, vector<2x32xf32> -> vector<2x32xf32>
    %9 = arith.addf %7, %8 : vector<2x32xf32>
    %10 = arith.negf %9 : vector<2x32xf32>
    %11 = math.exp %10 : vector<2x32xf32>
    %cst_11 = arith.constant 1.000000e+00 : f32
    %12 = vector.broadcast %cst_11 : f32 to vector<2x32xf32>
    %13 = arith.addf %12, %11 : vector<2x32xf32>
    %14 = arith.divf %12, %13 : vector<2x32xf32>
    %15 = arith.index_cast %c0_i32 : i32 to index
    %c0_12 = arith.constant 0 : index
    %c0_13 = arith.constant 0 : index
    %16 = vector.load %arg1[%15, %c0_12, %c0_13] : memref<8x2x32xf32, #tpu.memory_space<vmem>>, vector<1x2x32xf32>
    %17 = vector.shape_cast %16 : vector<1x2x32xf32> to vector<2x32xf32>
    %cst_14 = arith.constant dense<0.000000e+00> : vector<2x32xf32>
    %18 = tpu.matmul %4, %1, %cst_14 {dimension_numbers = #tpu.dot_dimension_numbers<[1], [0], [0], [1], [0, 0, 1, 1], [], []>} : vector<2x32xf32>, vector<32x32xf32>, vector<2x32xf32> -> vector<2x32xf32>
    %19 = arith.addf %17, %18 : vector<2x32xf32>
    %20 = arith.negf %19 : vector<2x32xf32>
    %21 = math.exp %20 : vector<2x32xf32>
    %cst_15 = arith.constant 1.000000e+00 : f32
    %22 = vector.broadcast %cst_15 : f32 to vector<2x32xf32>
    %23 = arith.addf %22, %21 : vector<2x32xf32>
    %24 = arith.divf %22, %23 : vector<2x32xf32>
    %25 = arith.index_cast %c0_i32 : i32 to index
    %c0_16 = arith.constant 0 : index
    %c0_17 = arith.constant 0 : index
    %26 = vector.load %arg2[%25, %c0_16, %c0_17] : memref<8x2x32xf32, #tpu.memory_space<vmem>>, vector<1x2x32xf32>
    %27 = vector.shape_cast %26 : vector<1x2x32xf32> to vector<2x32xf32>
    %cst_18 = arith.constant dense<0.000000e+00> : vector<2x32xf32>
    %28 = tpu.matmul %4, %2, %cst_18 {dimension_numbers = #tpu.dot_dimension_numbers<[1], [0], [0], [1], [0, 0, 1, 1], [], []>} : vector<2x32xf32>, vector<32x32xf32>, vector<2x32xf32> -> vector<2x32xf32>
    %29 = vector.broadcast %3 : vector<1x32xf32> to vector<2x32xf32>
    %30 = arith.addf %28, %29 : vector<2x32xf32>
    %31 = arith.mulf %14, %30 : vector<2x32xf32>
    %32 = arith.addf %27, %31 : vector<2x32xf32>
    %33 = math.tanh %32 : vector<2x32xf32>
    %34 = arith.subf %4, %33 : vector<2x32xf32>
    %35 = arith.mulf %24, %34 : vector<2x32xf32>
    %36 = arith.addf %33, %35 : vector<2x32xf32>
    %37 = arith.index_cast %c0_i32 : i32 to index
    %c0_19 = arith.constant 0 : index
    %c0_20 = arith.constant 0 : index
    %38 = vector.load %arg8[%37, %c0_19, %c0_20] : memref<8x2x32xf32, #tpu.memory_space<vmem>>, vector<1x2x32xf32>
    %39 = vector.shape_cast %38 : vector<1x2x32xf32> to vector<2x32xf32>
    %40 = vector.shape_cast %36 : vector<2x32xf32> to vector<1x2x32xf32>
    tpu.vector_store %arg8[%37, %c0_19, %c0_20], %40 {strides = array<i32>} : memref<8x2x32xf32, #tpu.memory_space<vmem>>, vector<1x2x32xf32>,
    %c1_i32 = arith.constant 1 : i32
    %41 = arith.index_cast %c1_i32 : i32 to index
    %c0_21 = arith.constant 0 : index
    %c0_22 = arith.constant 0 : index
    %42 = vector.load %arg0[%41, %c0_21, %c0_22] : memref<8x2x32xf32, #tpu.memory_space<vmem>>, vector<1x2x32xf32>
    %43 = vector.shape_cast %42 : vector<1x2x32xf32> to vector<2x32xf32>
    %cst_23 = arith.constant dense<0.000000e+00> : vector<2x32xf32>
    %44 = tpu.matmul %36, %0, %cst_23 {dimension_numbers = #tpu.dot_dimension_numbers<[1], [0], [0], [1], [0, 0, 1, 1], [], []>} : vector<2x32xf32>, vector<32x32xf32>, vector<2x32xf32> -> vector<2x32xf32>
    %45 = arith.addf %43, %44 : vector<2x32xf32>
    %46 = arith.negf %45 : vector<2x32xf32>
    %47 = math.exp %46 : vector<2x32xf32>
    %cst_24 = arith.constant 1.000000e+00 : f32
    %48 = vector.broadcast %cst_24 : f32 to vector<2x32xf32>
    %49 = arith.addf %48, %47 : vector<2x32xf32>
    %50 = arith.divf %48, %49 : vector<2x32xf32>
    %51 = arith.index_cast %c1_i32 : i32 to index
    %c0_25 = arith.constant 0 : index
    %c0_26 = arith.constant 0 : index
    %52 = vector.load %arg1[%51, %c0_25, %c0_26] : memref<8x2x32xf32, #tpu.memory_space<vmem>>, vector<1x2x32xf32>
    %53 = vector.shape_cast %52 : vector<1x2x32xf32> to vector<2x32xf32>
    %cst_27 = arith.constant dense<0.000000e+00> : vector<2x32xf32>
    %54 = tpu.matmul %36, %1, %cst_27 {dimension_numbers = #tpu.dot_dimension_numbers<[1], [0], [0], [1], [0, 0, 1, 1], [], []>} : vector<2x32xf32>, vector<32x32xf32>, vector<2x32xf32> -> vector<2x32xf32>
    %55 = arith.addf %53, %54 : vector<2x32xf32>
    %56 = arith.negf %55 : vector<2x32xf32>
    %57 = math.exp %56 : vector<2x32xf32>
    %cst_28 = arith.constant 1.000000e+00 : f32
    %58 = vector.broadcast %cst_28 : f32 to vector<2x32xf32>
    %59 = arith.addf %58, %57 : vector<2x32xf32>
    %60 = arith.divf %58, %59 : vector<2x32xf32>
    %61 = arith.index_cast %c1_i32 : i32 to index
    %c0_29 = arith.constant 0 : index
    %c0_30 = arith.constant 0 : index
    %62 = vector.load %arg2[%61, %c0_29, %c0_30] : memref<8x2x32xf32, #tpu.memory_space<vmem>>, vector<1x2x32xf32>
    %63 = vector.shape_cast %62 : vector<1x2x32xf32> to vector<2x32xf32>
    %cst_31 = arith.constant dense<0.000000e+00> : vector<2x32xf32>
    %64 = tpu.matmul %36, %2, %cst_31 {dimension_numbers = #tpu.dot_dimension_numbers<[1], [0], [0], [1], [0, 0, 1, 1], [], []>} : vector<2x32xf32>, vector<32x32xf32>, vector<2x32xf32> -> vector<2x32xf32>
    %65 = vector.broadcast %3 : vector<1x32xf32> to vector<2x32xf32>
    %66 = arith.addf %64, %65 : vector<2x32xf32>
    %67 = arith.mulf %50, %66 : vector<2x32xf32>
    %68 = arith.addf %63, %67 : vector<2x32xf32>
    %69 = math.tanh %68 : vector<2x32xf32>
    %70 = arith.subf %36, %69 : vector<2x32xf32>
    %71 = arith.mulf %60, %70 : vector<2x32xf32>
    %72 = arith.addf %69, %71 : vector<2x32xf32>
    %73 = arith.index_cast %c1_i32 : i32 to index
    %c0_32 = arith.constant 0 : index
    %c0_33 = arith.constant 0 : index
    %74 = vector.load %arg8[%73, %c0_32, %c0_33] : memref<8x2x32xf32, #tpu.memory_space<vmem>>, vector<1x2x32xf32>
    %75 = vector.shape_cast %74 : vector<1x2x32xf32> to vector<2x32xf32>
    %76 = vector.shape_cast %72 : vector<2x32xf32> to vector<1x2x32xf32>
    tpu.vector_store %arg8[%73, %c0_32, %c0_33], %76 {strides = array<i32>} : memref<8x2x32xf32, #tpu.memory_space<vmem>>, vector<1x2x32xf32>,
    %c2_i32 = arith.constant 2 : i32
    %77 = arith.index_cast %c2_i32 : i32 to index
    %c0_34 = arith.constant 0 : index
    %c0_35 = arith.constant 0 : index
    %78 = vector.load %arg0[%77, %c0_34, %c0_35] : memref<8x2x32xf32, #tpu.memory_space<vmem>>, vector<1x2x32xf32>
    %79 = vector.shape_cast %78 : vector<1x2x32xf32> to vector<2x32xf32>
    %cst_36 = arith.constant dense<0.000000e+00> : vector<2x32xf32>
    %80 = tpu.matmul %72, %0, %cst_36 {dimension_numbers = #tpu.dot_dimension_numbers<[1], [0], [0], [1], [0, 0, 1, 1], [], []>} : vector<2x32xf32>, vector<32x32xf32>, vector<2x32xf32> -> vector<2x32xf32>
    %81 = arith.addf %79, %80 : vector<2x32xf32>
    %82 = arith.negf %81 : vector<2x32xf32>
    %83 = math.exp %82 : vector<2x32xf32>
    %cst_37 = arith.constant 1.000000e+00 : f32
    %84 = vector.broadcast %cst_37 : f32 to vector<2x32xf32>
    %85 = arith.addf %84, %83 : vector<2x32xf32>
    %86 = arith.divf %84, %85 : vector<2x32xf32>
    %87 = arith.index_cast %c2_i32 : i32 to index
    %c0_38 = arith.constant 0 : index
    %c0_39 = arith.constant 0 : index
    %88 = vector.load %arg1[%87, %c0_38, %c0_39] : memref<8x2x32xf32, #tpu.memory_space<vmem>>, vector<1x2x32xf32>
    %89 = vector.shape_cast %88 : vector<1x2x32xf32> to vector<2x32xf32>
    %cst_40 = arith.constant dense<0.000000e+00> : vector<2x32xf32>
    %90 = tpu.matmul %72, %1, %cst_40 {dimension_numbers = #tpu.dot_dimension_numbers<[1], [0], [0], [1], [0, 0, 1, 1], [], []>} : vector<2x32xf32>, vector<32x32xf32>, vector<2x32xf32> -> vector<2x32xf32>
    %91 = arith.addf %89, %90 : vector<2x32xf32>
    %92 = arith.negf %91 : vector<2x32xf32>
    %93 = math.exp %92 : vector<2x32xf32>
    %cst_41 = arith.constant 1.000000e+00 : f32
    %94 = vector.broadcast %cst_41 : f32 to vector<2x32xf32>
    %95 = arith.addf %94, %93 : vector<2x32xf32>
    %96 = arith.divf %94, %95 : vector<2x32xf32>
    %97 = arith.index_cast %c2_i32 : i32 to index
    %c0_42 = arith.constant 0 : index
    %c0_43 = arith.constant 0 : index
    %98 = vector.load %arg2[%97, %c0_42, %c0_43] : memref<8x2x32xf32, #tpu.memory_space<vmem>>, vector<1x2x32xf32>
    %99 = vector.shape_cast %98 : vector<1x2x32xf32> to vector<2x32xf32>
    %cst_44 = arith.constant dense<0.000000e+00> : vector<2x32xf32>
    %100 = tpu.matmul %72, %2, %cst_44 {dimension_numbers = #tpu.dot_dimension_numbers<[1], [0], [0], [1], [0, 0, 1, 1], [], []>} : vector<2x32xf32>, vector<32x32xf32>, vector<2x32xf32> -> vector<2x32xf32>
    %101 = vector.broadcast %3 : vector<1x32xf32> to vector<2x32xf32>
    %102 = arith.addf %100, %101 : vector<2x32xf32>
    %103 = arith.mulf %86, %102 : vector<2x32xf32>
    %104 = arith.addf %99, %103 : vector<2x32xf32>
    %105 = math.tanh %104 : vector<2x32xf32>
    %106 = arith.subf %72, %105 : vector<2x32xf32>
    %107 = arith.mulf %96, %106 : vector<2x32xf32>
    %108 = arith.addf %105, %107 : vector<2x32xf32>
    %109 = arith.index_cast %c2_i32 : i32 to index
    %c0_45 = arith.constant 0 : index
    %c0_46 = arith.constant 0 : index
    %110 = vector.load %arg8[%109, %c0_45, %c0_46] : memref<8x2x32xf32, #tpu.memory_space<vmem>>, vector<1x2x32xf32>
    %111 = vector.shape_cast %110 : vector<1x2x32xf32> to vector<2x32xf32>
    %112 = vector.shape_cast %108 : vector<2x32xf32> to vector<1x2x32xf32>
    tpu.vector_store %arg8[%109, %c0_45, %c0_46], %112 {strides = array<i32>} : memref<8x2x32xf32, #tpu.memory_space<vmem>>, vector<1x2x32xf32>,
    %c3_i32 = arith.constant 3 : i32
    %113 = arith.index_cast %c3_i32 : i32 to index
    %c0_47 = arith.constant 0 : index
    %c0_48 = arith.constant 0 : index
    %114 = vector.load %arg0[%113, %c0_47, %c0_48] : memref<8x2x32xf32, #tpu.memory_space<vmem>>, vector<1x2x32xf32>
    %115 = vector.shape_cast %114 : vector<1x2x32xf32> to vector<2x32xf32>
    %cst_49 = arith.constant dense<0.000000e+00> : vector<2x32xf32>
    %116 = tpu.matmul %108, %0, %cst_49 {dimension_numbers = #tpu.dot_dimension_numbers<[1], [0], [0], [1], [0, 0, 1, 1], [], []>} : vector<2x32xf32>, vector<32x32xf32>, vector<2x32xf32> -> vector<2x32xf32>
    %117 = arith.addf %115, %116 : vector<2x32xf32>
    %118 = arith.negf %117 : vector<2x32xf32>
    %119 = math.exp %118 : vector<2x32xf32>
    %cst_50 = arith.constant 1.000000e+00 : f32
    %120 = vector.broadcast %cst_50 : f32 to vector<2x32xf32>
    %121 = arith.addf %120, %119 : vector<2x32xf32>
    %122 = arith.divf %120, %121 : vector<2x32xf32>
    %123 = arith.index_cast %c3_i32 : i32 to index
    %c0_51 = arith.constant 0 : index
    %c0_52 = arith.constant 0 : index
    %124 = vector.load %arg1[%123, %c0_51, %c0_52] : memref<8x2x32xf32, #tpu.memory_space<vmem>>, vector<1x2x32xf32>
    %125 = vector.shape_cast %124 : vector<1x2x32xf32> to vector<2x32xf32>
    %cst_53 = arith.constant dense<0.000000e+00> : vector<2x32xf32>
    %126 = tpu.matmul %108, %1, %cst_53 {dimension_numbers = #tpu.dot_dimension_numbers<[1], [0], [0], [1], [0, 0, 1, 1], [], []>} : vector<2x32xf32>, vector<32x32xf32>, vector<2x32xf32> -> vector<2x32xf32>
    %127 = arith.addf %125, %126 : vector<2x32xf32>
    %128 = arith.negf %127 : vector<2x32xf32>
    %129 = math.exp %128 : vector<2x32xf32>
    %cst_54 = arith.constant 1.000000e+00 : f32
    %130 = vector.broadcast %cst_54 : f32 to vector<2x32xf32>
    %131 = arith.addf %130, %129 : vector<2x32xf32>
    %132 = arith.divf %130, %131 : vector<2x32xf32>
    %133 = arith.index_cast %c3_i32 : i32 to index
    %c0_55 = arith.constant 0 : index
    %c0_56 = arith.constant 0 : index
    %134 = vector.load %arg2[%133, %c0_55, %c0_56] : memref<8x2x32xf32, #tpu.memory_space<vmem>>, vector<1x2x32xf32>
    %135 = vector.shape_cast %134 : vector<1x2x32xf32> to vector<2x32xf32>
    %cst_57 = arith.constant dense<0.000000e+00> : vector<2x32xf32>
    %136 = tpu.matmul %108, %2, %cst_57 {dimension_numbers = #tpu.dot_dimension_numbers<[1], [0], [0], [1], [0, 0, 1, 1], [], []>} : vector<2x32xf32>, vector<32x32xf32>, vector<2x32xf32> -> vector<2x32xf32>
    %137 = vector.broadcast %3 : vector<1x32xf32> to vector<2x32xf32>
    %138 = arith.addf %136, %137 : vector<2x32xf32>
    %139 = arith.mulf %122, %138 : vector<2x32xf32>
    %140 = arith.addf %135, %139 : vector<2x32xf32>
    %141 = math.tanh %140 : vector<2x32xf32>
    %142 = arith.subf %108, %141 : vector<2x32xf32>
    %143 = arith.mulf %132, %142 : vector<2x32xf32>
    %144 = arith.addf %141, %143 : vector<2x32xf32>
    %145 = arith.index_cast %c3_i32 : i32 to index
    %c0_58 = arith.constant 0 : index
    %c0_59 = arith.constant 0 : index
    %146 = vector.load %arg8[%145, %c0_58, %c0_59] : memref<8x2x32xf32, #tpu.memory_space<vmem>>, vector<1x2x32xf32>
    %147 = vector.shape_cast %146 : vector<1x2x32xf32> to vector<2x32xf32>
    %148 = vector.shape_cast %144 : vector<2x32xf32> to vector<1x2x32xf32>
    tpu.vector_store %arg8[%145, %c0_58, %c0_59], %148 {strides = array<i32>} : memref<8x2x32xf32, #tpu.memory_space<vmem>>, vector<1x2x32xf32>,
    %c4_i32 = arith.constant 4 : i32
    %149 = arith.index_cast %c4_i32 : i32 to index
    %c0_60 = arith.constant 0 : index
    %c0_61 = arith.constant 0 : index
    %150 = vector.load %arg0[%149, %c0_60, %c0_61] : memref<8x2x32xf32, #tpu.memory_space<vmem>>, vector<1x2x32xf32>
    %151 = vector.shape_cast %150 : vector<1x2x32xf32> to vector<2x32xf32>
    %cst_62 = arith.constant dense<0.000000e+00> : vector<2x32xf32>
    %152 = tpu.matmul %144, %0, %cst_62 {dimension_numbers = #tpu.dot_dimension_numbers<[1], [0], [0], [1], [0, 0, 1, 1], [], []>} : vector<2x32xf32>, vector<32x32xf32>, vector<2x32xf32> -> vector<2x32xf32>
    %153 = arith.addf %151, %152 : vector<2x32xf32>
    %154 = arith.negf %153 : vector<2x32xf32>
    %155 = math.exp %154 : vector<2x32xf32>
    %cst_63 = arith.constant 1.000000e+00 : f32
    %156 = vector.broadcast %cst_63 : f32 to vector<2x32xf32>
    %157 = arith.addf %156, %155 : vector<2x32xf32>
    %158 = arith.divf %156, %157 : vector<2x32xf32>
    %159 = arith.index_cast %c4_i32 : i32 to index
    %c0_64 = arith.constant 0 : index
    %c0_65 = arith.constant 0 : index
    %160 = vector.load %arg1[%159, %c0_64, %c0_65] : memref<8x2x32xf32, #tpu.memory_space<vmem>>, vector<1x2x32xf32>
    %161 = vector.shape_cast %160 : vector<1x2x32xf32> to vector<2x32xf32>
    %cst_66 = arith.constant dense<0.000000e+00> : vector<2x32xf32>
    %162 = tpu.matmul %144, %1, %cst_66 {dimension_numbers = #tpu.dot_dimension_numbers<[1], [0], [0], [1], [0, 0, 1, 1], [], []>} : vector<2x32xf32>, vector<32x32xf32>, vector<2x32xf32> -> vector<2x32xf32>
    %163 = arith.addf %161, %162 : vector<2x32xf32>
    %164 = arith.negf %163 : vector<2x32xf32>
    %165 = math.exp %164 : vector<2x32xf32>
    %cst_67 = arith.constant 1.000000e+00 : f32
    %166 = vector.broadcast %cst_67 : f32 to vector<2x32xf32>
    %167 = arith.addf %166, %165 : vector<2x32xf32>
    %168 = arith.divf %166, %167 : vector<2x32xf32>
    %169 = arith.index_cast %c4_i32 : i32 to index
    %c0_68 = arith.constant 0 : index
    %c0_69 = arith.constant 0 : index
    %170 = vector.load %arg2[%169, %c0_68, %c0_69] : memref<8x2x32xf32, #tpu.memory_space<vmem>>, vector<1x2x32xf32>
    %171 = vector.shape_cast %170 : vector<1x2x32xf32> to vector<2x32xf32>
    %cst_70 = arith.constant dense<0.000000e+00> : vector<2x32xf32>
    %172 = tpu.matmul %144, %2, %cst_70 {dimension_numbers = #tpu.dot_dimension_numbers<[1], [0], [0], [1], [0, 0, 1, 1], [], []>} : vector<2x32xf32>, vector<32x32xf32>, vector<2x32xf32> -> vector<2x32xf32>
    %173 = vector.broadcast %3 : vector<1x32xf32> to vector<2x32xf32>
    %174 = arith.addf %172, %173 : vector<2x32xf32>
    %175 = arith.mulf %158, %174 : vector<2x32xf32>
    %176 = arith.addf %171, %175 : vector<2x32xf32>
    %177 = math.tanh %176 : vector<2x32xf32>
    %178 = arith.subf %144, %177 : vector<2x32xf32>
    %179 = arith.mulf %168, %178 : vector<2x32xf32>
    %180 = arith.addf %177, %179 : vector<2x32xf32>
    %181 = arith.index_cast %c4_i32 : i32 to index
    %c0_71 = arith.constant 0 : index
    %c0_72 = arith.constant 0 : index
    %182 = vector.load %arg8[%181, %c0_71, %c0_72] : memref<8x2x32xf32, #tpu.memory_space<vmem>>, vector<1x2x32xf32>
    %183 = vector.shape_cast %182 : vector<1x2x32xf32> to vector<2x32xf32>
    %184 = vector.shape_cast %180 : vector<2x32xf32> to vector<1x2x32xf32>
    tpu.vector_store %arg8[%181, %c0_71, %c0_72], %184 {strides = array<i32>} : memref<8x2x32xf32, #tpu.memory_space<vmem>>, vector<1x2x32xf32>,
    %c5_i32 = arith.constant 5 : i32
    %185 = arith.index_cast %c5_i32 : i32 to index
    %c0_73 = arith.constant 0 : index
    %c0_74 = arith.constant 0 : index
    %186 = vector.load %arg0[%185, %c0_73, %c0_74] : memref<8x2x32xf32, #tpu.memory_space<vmem>>, vector<1x2x32xf32>
    %187 = vector.shape_cast %186 : vector<1x2x32xf32> to vector<2x32xf32>
    %cst_75 = arith.constant dense<0.000000e+00> : vector<2x32xf32>
    %188 = tpu.matmul %180, %0, %cst_75 {dimension_numbers = #tpu.dot_dimension_numbers<[1], [0], [0], [1], [0, 0, 1, 1], [], []>} : vector<2x32xf32>, vector<32x32xf32>, vector<2x32xf32> -> vector<2x32xf32>
    %189 = arith.addf %187, %188 : vector<2x32xf32>
    %190 = arith.negf %189 : vector<2x32xf32>
    %191 = math.exp %190 : vector<2x32xf32>
    %cst_76 = arith.constant 1.000000e+00 : f32
    %192 = vector.broadcast %cst_76 : f32 to vector<2x32xf32>
    %193 = arith.addf %192, %191 : vector<2x32xf32>
    %194 = arith.divf %192, %193 : vector<2x32xf32>
    %195 = arith.index_cast %c5_i32 : i32 to index
    %c0_77 = arith.constant 0 : index
    %c0_78 = arith.constant 0 : index
    %196 = vector.load %arg1[%195, %c0_77, %c0_78] : memref<8x2x32xf32, #tpu.memory_space<vmem>>, vector<1x2x32xf32>
    %197 = vector.shape_cast %196 : vector<1x2x32xf32> to vector<2x32xf32>
    %cst_79 = arith.constant dense<0.000000e+00> : vector<2x32xf32>
    %198 = tpu.matmul %180, %1, %cst_79 {dimension_numbers = #tpu.dot_dimension_numbers<[1], [0], [0], [1], [0, 0, 1, 1], [], []>} : vector<2x32xf32>, vector<32x32xf32>, vector<2x32xf32> -> vector<2x32xf32>
    %199 = arith.addf %197, %198 : vector<2x32xf32>
    %200 = arith.negf %199 : vector<2x32xf32>
    %201 = math.exp %200 : vector<2x32xf32>
    %cst_80 = arith.constant 1.000000e+00 : f32
    %202 = vector.broadcast %cst_80 : f32 to vector<2x32xf32>
    %203 = arith.addf %202, %201 : vector<2x32xf32>
    %204 = arith.divf %202, %203 : vector<2x32xf32>
    %205 = arith.index_cast %c5_i32 : i32 to index
    %c0_81 = arith.constant 0 : index
    %c0_82 = arith.constant 0 : index
    %206 = vector.load %arg2[%205, %c0_81, %c0_82] : memref<8x2x32xf32, #tpu.memory_space<vmem>>, vector<1x2x32xf32>
    %207 = vector.shape_cast %206 : vector<1x2x32xf32> to vector<2x32xf32>
    %cst_83 = arith.constant dense<0.000000e+00> : vector<2x32xf32>
    %208 = tpu.matmul %180, %2, %cst_83 {dimension_numbers = #tpu.dot_dimension_numbers<[1], [0], [0], [1], [0, 0, 1, 1], [], []>} : vector<2x32xf32>, vector<32x32xf32>, vector<2x32xf32> -> vector<2x32xf32>
    %209 = vector.broadcast %3 : vector<1x32xf32> to vector<2x32xf32>
    %210 = arith.addf %208, %209 : vector<2x32xf32>
    %211 = arith.mulf %194, %210 : vector<2x32xf32>
    %212 = arith.addf %207, %211 : vector<2x32xf32>
    %213 = math.tanh %212 : vector<2x32xf32>
    %214 = arith.subf %180, %213 : vector<2x32xf32>
    %215 = arith.mulf %204, %214 : vector<2x32xf32>
    %216 = arith.addf %213, %215 : vector<2x32xf32>
    %217 = arith.index_cast %c5_i32 : i32 to index
    %c0_84 = arith.constant 0 : index
    %c0_85 = arith.constant 0 : index
    %218 = vector.load %arg8[%217, %c0_84, %c0_85] : memref<8x2x32xf32, #tpu.memory_space<vmem>>, vector<1x2x32xf32>
    %219 = vector.shape_cast %218 : vector<1x2x32xf32> to vector<2x32xf32>
    %220 = vector.shape_cast %216 : vector<2x32xf32> to vector<1x2x32xf32>
    tpu.vector_store %arg8[%217, %c0_84, %c0_85], %220 {strides = array<i32>} : memref<8x2x32xf32, #tpu.memory_space<vmem>>, vector<1x2x32xf32>,
    %c6_i32 = arith.constant 6 : i32
    %221 = arith.index_cast %c6_i32 : i32 to index
    %c0_86 = arith.constant 0 : index
    %c0_87 = arith.constant 0 : index
    %222 = vector.load %arg0[%221, %c0_86, %c0_87] : memref<8x2x32xf32, #tpu.memory_space<vmem>>, vector<1x2x32xf32>
    %223 = vector.shape_cast %222 : vector<1x2x32xf32> to vector<2x32xf32>
    %cst_88 = arith.constant dense<0.000000e+00> : vector<2x32xf32>
    %224 = tpu.matmul %216, %0, %cst_88 {dimension_numbers = #tpu.dot_dimension_numbers<[1], [0], [0], [1], [0, 0, 1, 1], [], []>} : vector<2x32xf32>, vector<32x32xf32>, vector<2x32xf32> -> vector<2x32xf32>
    %225 = arith.addf %223, %224 : vector<2x32xf32>
    %226 = arith.negf %225 : vector<2x32xf32>
    %227 = math.exp %226 : vector<2x32xf32>
    %cst_89 = arith.constant 1.000000e+00 : f32
    %228 = vector.broadcast %cst_89 : f32 to vector<2x32xf32>
    %229 = arith.addf %228, %227 : vector<2x32xf32>
    %230 = arith.divf %228, %229 : vector<2x32xf32>
    %231 = arith.index_cast %c6_i32 : i32 to index
    %c0_90 = arith.constant 0 : index
    %c0_91 = arith.constant 0 : index
    %232 = vector.load %arg1[%231, %c0_90, %c0_91] : memref<8x2x32xf32, #tpu.memory_space<vmem>>, vector<1x2x32xf32>
    %233 = vector.shape_cast %232 : vector<1x2x32xf32> to vector<2x32xf32>
    %cst_92 = arith.constant dense<0.000000e+00> : vector<2x32xf32>
    %234 = tpu.matmul %216, %1, %cst_92 {dimension_numbers = #tpu.dot_dimension_numbers<[1], [0], [0], [1], [0, 0, 1, 1], [], []>} : vector<2x32xf32>, vector<32x32xf32>, vector<2x32xf32> -> vector<2x32xf32>
    %235 = arith.addf %233, %234 : vector<2x32xf32>
    %236 = arith.negf %235 : vector<2x32xf32>
    %237 = math.exp %236 : vector<2x32xf32>
    %cst_93 = arith.constant 1.000000e+00 : f32
    %238 = vector.broadcast %cst_93 : f32 to vector<2x32xf32>
    %239 = arith.addf %238, %237 : vector<2x32xf32>
    %240 = arith.divf %238, %239 : vector<2x32xf32>
    %241 = arith.index_cast %c6_i32 : i32 to index
    %c0_94 = arith.constant 0 : index
    %c0_95 = arith.constant 0 : index
    %242 = vector.load %arg2[%241, %c0_94, %c0_95] : memref<8x2x32xf32, #tpu.memory_space<vmem>>, vector<1x2x32xf32>
    %243 = vector.shape_cast %242 : vector<1x2x32xf32> to vector<2x32xf32>
    %cst_96 = arith.constant dense<0.000000e+00> : vector<2x32xf32>
    %244 = tpu.matmul %216, %2, %cst_96 {dimension_numbers = #tpu.dot_dimension_numbers<[1], [0], [0], [1], [0, 0, 1, 1], [], []>} : vector<2x32xf32>, vector<32x32xf32>, vector<2x32xf32> -> vector<2x32xf32>
    %245 = vector.broadcast %3 : vector<1x32xf32> to vector<2x32xf32>
    %246 = arith.addf %244, %245 : vector<2x32xf32>
    %247 = arith.mulf %230, %246 : vector<2x32xf32>
    %248 = arith.addf %243, %247 : vector<2x32xf32>
    %249 = math.tanh %248 : vector<2x32xf32>
    %250 = arith.subf %216, %249 : vector<2x32xf32>
    %251 = arith.mulf %240, %250 : vector<2x32xf32>
    %252 = arith.addf %249, %251 : vector<2x32xf32>
    %253 = arith.index_cast %c6_i32 : i32 to index
    %c0_97 = arith.constant 0 : index
    %c0_98 = arith.constant 0 : index
    %254 = vector.load %arg8[%253, %c0_97, %c0_98] : memref<8x2x32xf32, #tpu.memory_space<vmem>>, vector<1x2x32xf32>
    %255 = vector.shape_cast %254 : vector<1x2x32xf32> to vector<2x32xf32>
    %256 = vector.shape_cast %252 : vector<2x32xf32> to vector<1x2x32xf32>
    tpu.vector_store %arg8[%253, %c0_97, %c0_98], %256 {strides = array<i32>} : memref<8x2x32xf32, #tpu.memory_space<vmem>>, vector<1x2x32xf32>,
    %c7_i32 = arith.constant 7 : i32
    %257 = arith.index_cast %c7_i32 : i32 to index
    %c0_99 = arith.constant 0 : index
    %c0_100 = arith.constant 0 : index
    %258 = vector.load %arg0[%257, %c0_99, %c0_100] : memref<8x2x32xf32, #tpu.memory_space<vmem>>, vector<1x2x32xf32>
    %259 = vector.shape_cast %258 : vector<1x2x32xf32> to vector<2x32xf32>
    %cst_101 = arith.constant dense<0.000000e+00> : vector<2x32xf32>
    %260 = tpu.matmul %252, %0, %cst_101 {dimension_numbers = #tpu.dot_dimension_numbers<[1], [0], [0], [1], [0, 0, 1, 1], [], []>} : vector<2x32xf32>, vector<32x32xf32>, vector<2x32xf32> -> vector<2x32xf32>
    %261 = arith.addf %259, %260 : vector<2x32xf32>
    %262 = arith.negf %261 : vector<2x32xf32>
    %263 = math.exp %262 : vector<2x32xf32>
    %cst_102 = arith.constant 1.000000e+00 : f32
    %264 = vector.broadcast %cst_102 : f32 to vector<2x32xf32>
    %265 = arith.addf %264, %263 : vector<2x32xf32>
    %266 = arith.divf %264, %265 : vector<2x32xf32>
    %267 = arith.index_cast %c7_i32 : i32 to index
    %c0_103 = arith.constant 0 : index
    %c0_104 = arith.constant 0 : index
    %268 = vector.load %arg1[%267, %c0_103, %c0_104] : memref<8x2x32xf32, #tpu.memory_space<vmem>>, vector<1x2x32xf32>
    %269 = vector.shape_cast %268 : vector<1x2x32xf32> to vector<2x32xf32>
    %cst_105 = arith.constant dense<0.000000e+00> : vector<2x32xf32>
    %270 = tpu.matmul %252, %1, %cst_105 {dimension_numbers = #tpu.dot_dimension_numbers<[1], [0], [0], [1], [0, 0, 1, 1], [], []>} : vector<2x32xf32>, vector<32x32xf32>, vector<2x32xf32> -> vector<2x32xf32>
    %271 = arith.addf %269, %270 : vector<2x32xf32>
    %272 = arith.negf %271 : vector<2x32xf32>
    %273 = math.exp %272 : vector<2x32xf32>
    %cst_106 = arith.constant 1.000000e+00 : f32
    %274 = vector.broadcast %cst_106 : f32 to vector<2x32xf32>
    %275 = arith.addf %274, %273 : vector<2x32xf32>
    %276 = arith.divf %274, %275 : vector<2x32xf32>
    %277 = arith.index_cast %c7_i32 : i32 to index
    %c0_107 = arith.constant 0 : index
    %c0_108 = arith.constant 0 : index
    %278 = vector.load %arg2[%277, %c0_107, %c0_108] : memref<8x2x32xf32, #tpu.memory_space<vmem>>, vector<1x2x32xf32>
    %279 = vector.shape_cast %278 : vector<1x2x32xf32> to vector<2x32xf32>
    %cst_109 = arith.constant dense<0.000000e+00> : vector<2x32xf32>
    %280 = tpu.matmul %252, %2, %cst_109 {dimension_numbers = #tpu.dot_dimension_numbers<[1], [0], [0], [1], [0, 0, 1, 1], [], []>} : vector<2x32xf32>, vector<32x32xf32>, vector<2x32xf32> -> vector<2x32xf32>
    %281 = vector.broadcast %3 : vector<1x32xf32> to vector<2x32xf32>
    %282 = arith.addf %280, %281 : vector<2x32xf32>
    %283 = arith.mulf %266, %282 : vector<2x32xf32>
    %284 = arith.addf %279, %283 : vector<2x32xf32>
    %285 = math.tanh %284 : vector<2x32xf32>
    %286 = arith.subf %252, %285 : vector<2x32xf32>
    %287 = arith.mulf %276, %286 : vector<2x32xf32>
    %288 = arith.addf %285, %287 : vector<2x32xf32>
    %289 = arith.index_cast %c7_i32 : i32 to index
    %c0_110 = arith.constant 0 : index
    %c0_111 = arith.constant 0 : index
    %290 = vector.load %arg8[%289, %c0_110, %c0_111] : memref<8x2x32xf32, #tpu.memory_space<vmem>>, vector<1x2x32xf32>
    %291 = vector.shape_cast %290 : vector<1x2x32xf32> to vector<2x32xf32>
    %292 = vector.shape_cast %288 : vector<2x32xf32> to vector<1x2x32xf32>
    tpu.vector_store %arg8[%289, %c0_110, %c0_111], %292 {strides = array<i32>} : memref<8x2x32xf32, #tpu.memory_space<vmem>>, vector<1x2x32xf32>,
    %c8_i32 = arith.constant 8 : i32
    %c0_112 = arith.constant 0 : index
    %c0_113 = arith.constant 0 : index
    %293 = vector.load %arg9[%c0_112, %c0_113] : memref<2x32xf32, #tpu.memory_space<vmem>>, vector<2x32xf32>
    tpu.vector_store %arg9[%c0_112, %c0_113], %288 {strides = array<i32>} : memref<2x32xf32, #tpu.memory_space<vmem>>, vector<2x32xf32>,
    return
  }
}

module attributes {stable_mosaic.version = 11 : i64} {
  func.func @_fc2_kernel(%arg0: memref<16x32xf32, #tpu.memory_space<vmem>>, %arg1: memref<32x5xf32, #tpu.memory_space<vmem>>, %arg2: memref<1x5xf32, #tpu.memory_space<vmem>>, %arg3: memref<16x5xf32, #tpu.memory_space<vmem>>) attributes {dimension_semantics = [], scalar_prefetch = 0 : i64, scratch_operands = 0 : i64, tpu.core_type = #tpu.core_type<tc>} {
    %c0 = arith.constant 0 : index
    %c0_0 = arith.constant 0 : index
    %0 = vector.load %arg0[%c0, %c0_0] : memref<16x32xf32, #tpu.memory_space<vmem>>, vector<16x32xf32>
    %c0_1 = arith.constant 0 : index
    %c0_2 = arith.constant 0 : index
    %1 = vector.load %arg1[%c0_1, %c0_2] : memref<32x5xf32, #tpu.memory_space<vmem>>, vector<32x5xf32>
    %cst = arith.constant dense<0.000000e+00> : vector<16x5xf32>
    %2 = tpu.matmul %0, %1, %cst {dimension_numbers = #tpu.dot_dimension_numbers<[1], [0], [0], [1], [0, 0, 1, 1], [], []>} : vector<16x32xf32>, vector<32x5xf32>, vector<16x5xf32> -> vector<16x5xf32>
    %c0_3 = arith.constant 0 : index
    %c0_4 = arith.constant 0 : index
    %3 = vector.load %arg2[%c0_3, %c0_4] : memref<1x5xf32, #tpu.memory_space<vmem>>, vector<1x5xf32>
    %4 = vector.broadcast %3 : vector<1x5xf32> to vector<16x5xf32>
    %5 = arith.addf %2, %4 : vector<16x5xf32>
    %c0_5 = arith.constant 0 : index
    %c0_6 = arith.constant 0 : index
    %6 = vector.load %arg3[%c0_5, %c0_6] : memref<16x5xf32, #tpu.memory_space<vmem>>, vector<16x5xf32>
    tpu.vector_store %arg3[%c0_5, %c0_6], %5 {strides = array<i32>} : memref<16x5xf32, #tpu.memory_space<vmem>>, vector<16x5xf32>,
    return
  }
}

</mosaic_0001>

<bundles_post_ra>
// kernel: rnn_fast_agent_forward.5
= control target key start
LH: loop header
LB: loop body
LE: loop exit
PB: predicated region body
PF: predicated region fallthrough
CT: control target
= control target key end

     0   :  { %vm27_vm0 = vcmask 261120   ;;  %vm109_vm1 = vcmask 39936   ;;  %s191_s1 = inlined_call_operand.vmem [shape: f32[32,5], index: 1, kind: input, shape index: {}]   ;;  %s192_s0 = inlined_call_operand.vmem [shape: f32[16,32], index: 0, kind: input, shape index: {}]   ;;  %s193_s2 = inlined_call_operand.vmem [shape: f32[1,5], index: 2, kind: input, shape index: {}]   ;;  %s194_s3 = inlined_call_operand.vmem [shape: f32[16,5], index: 3, kind: output, shape index: {}]  }
   0x1   :  { %v16_v0 = vld [vmem:[%s191_s1] sm:$0xff]  ;;  %v17_v1 = vld [vmem:[%s191_s1 + $0x8] sm:$0xff]  ;;  %v18_v2 = vld [vmem:[%s191_s1 + $0x10] sm:$0xff] }
   0x2   :  { %v136_v3 = vpack.c.bf16 %v17_v1, %v16_v0  ;;  %v19_v4 = vld [vmem:[%s191_s1 + $0x18] sm:$0xff]  ;;  %v14_v5 = vld [vmem:[%s192_s0] sm:$0xff]  ;;  %v15_v7 = vld [vmem:[%s192_s0 + $0x8] sm:$0xff] }
   0x3   :  { %v140_v6 = vpack.c.bf16 %v19_v4, %v18_v2  ;;  %133 = vmatprep.mubr.msk.f32.mxu0 %vm27_vm0, %v14_v5  ;;  %v116_v8 = vld [vmem:[%s193_s2] ss:$0 sm:$0xff] }
   0x4   :  { %137 = vmatprep.subr.bf16.mxu0 %v136_v3 }
   0x5   :  { %139 = vmatpush3.bf16.msra.mxu0 %v136_v3 }
   0x6   :  { %141 = vmatprep.subr.bf16.mxu0 %v140_v6 }
   0x9   :  { %143 = vmatpush3.bf16.msra.mxu0 %v140_v6 }
   0xc   :  { %134 = vmatmul.mubr.msk.f32.vlgmr.msra.gmra.mrb[0].mxu0 %vm27_vm0, %v15_v7 }
  0xdf   :  { %v135_v9 = vpop.f32.mrb[0].mxu0 }
  0xe0   :  { %v106_v10 = vadd.f32 %v135_v9, %v116_v8  ;;  %v100_v11 = vpop.f32.mrb[1].mxu0 }
  0xe1   :  { %v101_v12 = vadd.f32 %v116_v8, %v100_v11 }
  0xe2   :  { %111 = vst.msk [vmem:[%s194_s3 + $0x8] sm:$0xff] %vm109_vm1, %v106_v10 }
  0xe3   :  { %110 = vst.msk [vmem:[%s194_s3] sm:$0xff] %vm109_vm1, %v101_v12 }

// kernel: rnn_fast_agent_forward.3
= control target key start
LH: loop header
LB: loop body
LE: loop exit
PB: predicated region body
PF: predicated region fallthrough
CT: control target
= control target key end

     0   :  { %vm31_vm0 = vcmask 130048   ;;  %vm126_vm1 = vcmask 261120   ;;  %vm208_vm2 = vcmask 785408   ;;  %s327_s1 = inlined_call_operand.vmem [shape: f32[16,32], index: 1, kind: input, shape index: {}]   ;;  %s328_s0 = inlined_call_operand.vmem [shape: f32[16,16], index: 0, kind: input, shape index: {}]   ;;  %s329_s3 = inlined_call_operand.vmem [shape: f32[32,96], index: 3, kind: input, shape index: {}]   ;;  %s330_s2 = inlined_call_operand.vmem [shape: f32[1,32], index: 2, kind: input, shape index: {}]   ;;  %s331_s4 = inlined_call_operand.vmem [shape: f32[1,96], index: 4, kind: input, shape index: {}]   ;;  %s332_s5 = inlined_call_operand.vmem [shape: f32[16,96], index: 5, kind: output, shape index: {}]  }
   0x1   :  { %v22_v0 = vld [vmem:[%s327_s1] sm:$0xff]  ;;  %v23_v1 = vld [vmem:[%s327_s1 + $0x8] sm:$0xff]  ;;  %v117_v8 = vld [vmem:[%s329_s3 + $0x10] sm:$0xff] }
   0x2   :  { %v20_v2 = vld [vmem:[%s328_s0] sm:$0xff]  ;;  %v249_v3 = vpack.c.bf16 %v23_v1, %v22_v0  ;;  %v116_v5 = vld [vmem:[%s329_s3 + $0x8] sm:$0xff]  ;;  %v118_v9 = vld [vmem:[%s329_s3 + $0x18] sm:$0xff] }
   0x3   :  { %235 = vmatprep.mubr.msk.f32.mxu0 %vm31_vm0, %v20_v2  ;;  %v115_v4 = vld [vmem:[%s329_s3] sm:$0xff]  ;;  %v21_v7 = vld [vmem:[%s328_s0 + $0x8] sm:$0xff]  ;;  %v257_v10 = vpack.c.bf16 %v118_v9, %v117_v8 }
   0x4   :  { %v253_v6 = vpack.c.bf16 %v116_v5, %v115_v4  ;;  %250 = vmatprep.subr.bf16.mxu0 %v249_v3  ;;  %v215_v11 = vld [vmem:[%s330_s2] ss:$0 sm:$0xff] }
   0x5   :  { %252 = vmatpush3.bf16.msra.mxu0 %v249_v3  ;;  %v218_v18 = vld [vmem:[%s331_s4] ss:$0 sm:$0xff] }
   0x6   :  { %254 = vmatprep.subr.bf16.mxu1 %v253_v6 }
   0x7   :  { %256 = vmatpush3.bf16.msra.mxu1 %v253_v6 }
   0x8   :  { %236 = vmatmul.mubr.msk.f32.vlgmr.msra.gmra.mrb[0].mxu0 %vm31_vm0, %v21_v7  ;;  %258 = vmatprep.subr.bf16.mxu1 %v257_v10 }
   0xb   :  { %260 = vmatpush3.bf16.msra.mxu1 %v257_v10 }
  0xdb   :  { %v237_v12 = vpop.f32.mrb[0].mxu0 }
  0xdc   :  { %v110_v13 = vadd.f32 %v237_v12, %v215_v11  ;;  %v104_v14 = vpop.f32.mrb[1].mxu0 }
  0xdd   :  { %v105_v15 = vadd.f32 %v215_v11, %v104_v14 }
  0xde   :  { %v114_v17 = vmax.f32 %v110_v13, 0.0 }
  0xdf   :  { %v113_v16 = vmax.f32 %v105_v15, 0.0 }
  0xe1   :  { %246 = vmatprep.mubr.msk.f32.mxu1 %vm126_vm1, %v113_v16 }
  0xe2   :  { %247 = vmatmul.mubr.msk.f32.vlgmr.msra.gmra.mrb[0].mxu1 %vm126_vm1, %v114_v17 }
 0x1b5   :  { %v248_v19 = vpop.f32.mrb[0].mxu1 }
 0x1b6   :  { %v205_v20 = vadd.f32 %v248_v19, %v218_v18  ;;  %v199_v21 = vpop.f32.mrb[1].mxu1 }
 0x1b7   :  { %v200_v22 = vadd.f32 %v218_v18, %v199_v21 }
 0x1b8   :  { %210 = vst.msk [vmem:[%s332_s5 + $0x8] sm:$0xff] %vm208_vm2, %v205_v20 }
 0x1b9   :  { %209 = vst.msk [vmem:[%s332_s5] sm:$0xff] %vm208_vm2, %v200_v22 }

// kernel: rnn_fast_agent_forward.4
= control target key start
LH: loop header
LB: loop body
LE: loop exit
PB: predicated region body
PF: predicated region fallthrough
CT: control target
= control target key end

     0   :  { %v2702_v3 = vmov 0.0|0.0   ;;  %vm2703_vm0 = vmmov 0   ;;  %v2704_v6 = vmov 0.0   ;;  %s3105_s0 = inlined_call_operand.vmem [shape: f32[8,2,32], index: 0, kind: input, shape index: {}]   ;;  %s3106_s1 = inlined_call_operand.vmem [shape: f32[8,2,32], index: 1, kind: input, shape index: {}]   ;;  %s3107_s2 = inlined_call_operand.vmem [shape: f32[8,2,32], index: 2, kind: input, shape index: {}]   ;;  %s3108_s3 = inlined_call_operand.vmem [shape: f32[2,32], index: 3, kind: input, shape index: {}]   ;;  %s3109_s4 = inlined_call_operand.vmem [shape: f32[32,32], index: 4, kind: input, shape index: {}]   ;;  %s3110_s5 = inlined_call_operand.vmem [shape: f32[32,32], index: 5, kind: input, shape index: {}]   ;;  %s3111_s6 = inlined_call_operand.vmem [shape: f32[32,32], index: 6, kind: input, shape index: {}]   ;;  %s3112_s7 = inlined_call_operand.vmem [shape: f32[1,32], index: 7, kind: input, shape index: {}]   ;;  %s3113_s8 = inlined_call_operand.vmem [shape: f32[8,2,32], index: 8, kind: output, shape index: {0}]   ;;  %s3114_s9 = inlined_call_operand.hbm [shape: f32[2,32], index: 9, kind: output, shape index: {1}]  }
   0x1   :  { %v32_v0 = vld [vmem:[%s3109_s4] sm:$0xff]  ;;  %v33_v1 = vld [vmem:[%s3109_s4 + $0x8] sm:$0xff]  ;;  %v34_v2 = vld [vmem:[%s3109_s4 + $0x10] sm:$0xff]  ;;  %2450 = vmatprep.subr.bf16.mxu0 %v2702_v3  ;;  %2194 = vmatprep.mubr.msk.f32.mxu0 %vm2703_vm0, %v2704_v6 }
   0x2   :  { %v2766_v4 = vpack.c.bf16 %v33_v1, %v32_v0  ;;  %v35_v5 = vld [vmem:[%s3109_s4 + $0x18] sm:$0xff]  ;;  %v36_v7 = vld [vmem:[%s3110_s5] sm:$0xff]  ;;  %2456 = vmatprep.subr.bf16.mxu1 %v2702_v3  ;;  %v37_v8 = vld [vmem:[%s3110_s5 + $0x8] sm:$0xff]  ;;  %2205 = vmatprep.mubr.msk.f32.mxu1 %vm2703_vm0, %v2704_v6 }
   0x3   :  { %v38_v9 = vld [vmem:[%s3110_s5 + $0x10] sm:$0xff]  ;;  %v39_v10 = vld [vmem:[%s3110_s5 + $0x18] sm:$0xff]  ;;  %v2789_v11 = vpack.c.bf16 %v35_v5, %v34_v2  ;;  %v2791_v12 = vpack.c.bf16 %v37_v8, %v36_v7  ;;  %v40_v13 = vld [vmem:[%s3111_s6] sm:$0xff] }
   0x4   :  { %2452 = vmatpush3.bf16.msra.mxu0 %v2766_v4  ;;  %v41_v14 = vld [vmem:[%s3111_s6 + $0x8] sm:$0xff] }
   0x5   :  { %2453 = vmatprep.subr.bf16.mxu0 %v2702_v3 }
   0x6   :  { %15 = vsyncpa [#allocation3], 0  ;;  %2458 = vmatpush3.bf16.msra.mxu1 %v2791_v12  ;;  %v2801_v15 = vpack.c.bf16 %v39_v10, %v38_v9  ;;  %v45_v16 = vld [vmem:[%s3108_s3] sm:$0x3]  ;;  %vm47_vm1 = vcmask 261120   ;;  %v2808_v17 = vpack.c.bf16 %v41_v14, %v40_v13  ;;  %v42_v18 = vld [vmem:[%s3111_s6 + $0x10] sm:$0xff] }
   0x7   :  { %2459 = vmatprep.subr.bf16.mxu1 %v2702_v3  ;;  %v43_v19 = vld [vmem:[%s3111_s6 + $0x18] sm:$0xff]  ;;  %v46_v21 = vld [vmem:[%s3105_s0] sm:$0x3]  ;;  %vm289_vm2 = vcmask 254976   ;;  %v2003_v48 = vld [vmem:[%s3105_s0 + $0x2] sm:$0x3] }
   0x8   :  { %2455 = vmatpush3.bf16.msra.mxu0 %v2789_v11  ;;  %v2821_v20 = vpack.c.bf16 %v43_v19, %v42_v18  ;;  %v128_v28 = vld [vmem:[%s3106_s1] sm:$0x3]  ;;  %v2006_v55 = vld [vmem:[%s3106_s1 + $0x2] sm:$0x3] }
   0x9   :  { %2462 = vmatprep.subr.bf16.mxu0 %v2702_v3  ;;  %v2851_v35 = vld [vmem:[%s3112_s7] ss:$0 sm:$0xff]  ;;  %v2009_v1 = vld [vmem:[%s3107_s2 + $0x2] sm:$0x3] }
   0xa   :  { %2461 = vmatpush3.bf16.msra.mxu1 %v2801_v15  ;;  %v206_v40 = vld [vmem:[%s3107_s2] sm:$0x3] }
   0xb   :  { %2195 = vmatmul.mubr.msk.f32.vlgmr.msra.gmra.mrb[0].mxu0 %vm47_vm1, %v45_v16  ;;  %2468 = vmatprep.subr.bf16.mxu1 %v2702_v3 }
   0xc   :  { %2464 = vmatpush3.bf16.msra.mxu0 %v2808_v17  ;;  %2216 = vmatprep.mubr.msk.f32.mxu0 %vm2703_vm0, %v2704_v6 }
   0xd   :  { %2206 = vmatmul.mubr.msk.f32.vlgmr.msra.gmra.mrb[0].mxu1 %vm47_vm1, %v45_v16  ;;  %2465 = vmatprep.subr.bf16.mxu0 %v2702_v3 }
   0xe   :  { %2470 = vmatpush3.bf16.msra.mxu1 %v2766_v4  ;;  %2227 = vmatprep.mubr.msk.f32.mxu1 %vm2703_vm0, %v2704_v6 }
   0xf   :  { %2471 = vmatprep.subr.bf16.mxu1 %v2702_v3 }
  0x10   :  { %2467 = vmatpush3.bf16.msra.mxu0 %v2821_v20 }
  0x11   :  { %2474 = vmatprep.subr.bf16.mxu0 %v2702_v3 }
  0x12   :  { %2473 = vmatpush3.bf16.msra.mxu1 %v2789_v11 }
  0x13   :  { %2217 = vmatmul.mubr.msk.f32.vlgmr.msra.gmra.mrb[2].mxu0 %vm47_vm1, %v45_v16  ;;  %2480 = vmatprep.subr.bf16.mxu1 %v2702_v3 }
  0x14   :  { %2476 = vmatpush3.bf16.msra.mxu0 %v2791_v12  ;;  %2238 = vmatprep.mubr.msk.f32.mxu0 %vm2703_vm0, %v2704_v6 }
  0x15   :  { %2477 = vmatprep.subr.bf16.mxu0 %v2702_v3 }
  0x18   :  { %2479 = vmatpush3.bf16.msra.mxu0 %v2801_v15 }
  0x19   :  { %2486 = vmatprep.subr.bf16.mxu0 %v2702_v3 }
  0xde   :  { %v117_v22 = vpop.f32.mrb[0].mxu0 }
  0xdf   :  { %v121_v23 = vadd.f32 %v117_v22, %v46_v21  ;;  %v2196_v24 = vpop.f32.mrb[1].mxu0 }
  0xe0   :  { %v195_v25 = vpop.f32.mrb[0].mxu1 }
  0xe1   :  { %v1998_v26 = vmul.f32 -1.442695, %v121_v23  ;;  %v2207_v27 = vpop.f32.mrb[1].mxu1  ;;  %v199_v29 = vadd.f32 %v195_v25, %v128_v28  ;;  %v2015_v25 = vld [vmem:[%s3106_s1 + $0x4] sm:$0x3] }
  0xe3   :  { %2598 = vpow2.f32 %v1998_v26  ;;  %v2000_v32 = vmul.f32 -1.442695, %v199_v29 }
  0xe5   :  { %2600 = vpow2.f32 %v2000_v32 }
  0xe6   :  { %v279_v30 = vpop.f32.mrb[2].mxu0 }
  0xe7   :  { %v2218_v31 = vpop.f32.mrb[3].mxu0  ;;  %v280_v37 = vadd.f32 %v2851_v35, %v279_v30 }
  0xed   :  { %v2599_v33 = vpop.eup %2598 }
  0xee   :  { %v125_v34 = vadd.f32 1.0, %v2599_v33 }
  0xef   :  { %v2601_v36 = vpop.eup %2600 }
  0xf0   :  { %2602 = vrcp.f32 %v125_v34  ;;  %v203_v39 = vadd.f32 1.0, %v2601_v36  ;;  %v2018_v36 = vld [vmem:[%s3107_s2 + $0x4] sm:$0x3] }
  0xf2   :  { %2604 = vrcp.f32 %v203_v39 }
  0xfa   :  { %v2603_v38 = vpop.eup %2602 }
  0xfb   :  { %v283_v41 = vmul.f32 %v2603_v38, %v280_v37 }
  0xfc   :  { %v2605_v43 = vpop.eup %2604 }
  0xfd   :  { %v284_v42 = vadd.f32 %v283_v41, %v206_v40 }
  0xff   :  { %2606 = vtanh.f32 %v284_v42 }
 0x109   :  { %v2607_v44 = vpop.eup %2606 }
 0x10a   :  { %v286_v45 = vsub.f32 %v45_v16, %v2607_v44  ;;  %v2012_v16 = vld [vmem:[%s3105_s0 + $0x4] sm:$0x3] }
 0x10c   :  { %v287_v46 = vmul.f32 %v2605_v43, %v286_v45  ;;  %v2021_v45 = vld [vmem:[%s3105_s0 + $0x6] sm:$0x3] }
 0x10e   :  { %v288_v47 = vadd.f32 %v2607_v44, %v287_v46 }
 0x110   :  { %2228 = vmatmul.mubr.msk.f32.vlgmr.msra.gmra.mrb[2].mxu1 %vm47_vm1, %v288_v47  ;;  %2239 = vmatmul.mubr.msk.f32.vlgmr.msra.gmra.mrb[4].mxu0 %vm47_vm1, %v288_v47  ;;  %290 = vst.msk [vmem:[%s3113_s8] sm:$0x3] %vm289_vm2, %v288_v47 }
 0x111   :  { %2482 = vmatpush3.bf16.msra.mxu1 %v2808_v17  ;;  %2249 = vmatprep.mubr.msk.f32.mxu1 %vm2703_vm0, %v2704_v6 }
 0x112   :  { %2483 = vmatprep.subr.bf16.mxu1 %v2702_v3  ;;  %2488 = vmatpush3.bf16.msra.mxu0 %v2766_v4 }
 0x113   :  { %2489 = vmatprep.subr.bf16.mxu0 %v2702_v3  ;;  %2260 = vmatprep.mubr.msk.f32.mxu0 %vm2703_vm0, %v2704_v6 }
 0x115   :  { %2485 = vmatpush3.bf16.msra.mxu1 %v2821_v20 }
 0x116   :  { %2492 = vmatprep.subr.bf16.mxu1 %v2702_v3  ;;  %2491 = vmatpush3.bf16.msra.mxu0 %v2789_v11 }
 0x117   :  { %2498 = vmatprep.subr.bf16.mxu0 %v2702_v3 }
 0x118   :  { %2250 = vmatmul.mubr.msk.f32.vlgmr.msra.gmra.mrb[4].mxu1 %vm47_vm1, %v288_v47 }
 0x119   :  { %2494 = vmatpush3.bf16.msra.mxu1 %v2791_v12  ;;  %2271 = vmatprep.mubr.msk.f32.mxu1 %vm2703_vm0, %v2704_v6 }
 0x11a   :  { %2495 = vmatprep.subr.bf16.mxu1 %v2702_v3 }
 0x11d   :  { %2497 = vmatpush3.bf16.msra.mxu1 %v2801_v15 }
 0x11e   :  { %2504 = vmatprep.subr.bf16.mxu1 %v2702_v3 }
 0x1e3   :  { %v362_v49 = vpop.f32.mrb[2].mxu1  ;;  %v441_v50 = vpop.f32.mrb[4].mxu0 }
 0x1e4   :  { %v366_v51 = vadd.f32 %v2003_v48, %v362_v49  ;;  %v2229_v52 = vpop.f32.mrb[3].mxu1  ;;  %v2240_v53 = vpop.f32.mrb[5].mxu0  ;;  %v445_v57 = vadd.f32 %v2006_v55, %v441_v50 }
 0x1e5   :  { %v2024_v52 = vld [vmem:[%s3106_s1 + $0x6] sm:$0x3] }
 0x1e6   :  { %v2005_v54 = vmul.f32 -1.442695, %v366_v51  ;;  %v2008_v59 = vmul.f32 -1.442695, %v445_v57 }
 0x1e8   :  { %2608 = vpow2.f32 %v2005_v54 }
 0x1e9   :  { %2610 = vpow2.f32 %v2008_v59 }
 0x1eb   :  { %v520_v56 = vpop.f32.mrb[4].mxu1 }
 0x1ec   :  { %v2251_v58 = vpop.f32.mrb[5].mxu1  ;;  %v521_v63 = vadd.f32 %v2851_v35, %v520_v56 }
 0x1f2   :  { %v2609_v60 = vpop.eup %2608 }
 0x1f3   :  { %v370_v61 = vadd.f32 1.0, %v2609_v60  ;;  %v2611_v62 = vpop.eup %2610 }
 0x1f4   :  { %v449_v5 = vadd.f32 1.0, %v2611_v62  ;;  %v2027_v62 = vld [vmem:[%s3107_s2 + $0x6] sm:$0x3] }
 0x1f5   :  { %2612 = vrcp.f32 %v370_v61 }
 0x1ff   :  { %v2613_v0 = vpop.eup %2612 }
 0x200   :  { %v524_v2 = vmul.f32 %v2613_v0, %v521_v63 }
 0x202   :  { %v525_v7 = vadd.f32 %v2009_v1, %v524_v2 }
 0x204   :  { %2614 = vtanh.f32 %v525_v7 }
 0x205   :  { %2616 = vrcp.f32 %v449_v5 }
 0x20e   :  { %v2615_v8 = vpop.eup %2614 }
 0x20f   :  { %v527_v9 = vsub.f32 %v288_v47, %v2615_v8  ;;  %v2617_v10 = vpop.eup %2616 }
 0x211   :  { %v528_v13 = vmul.f32 %v2617_v10, %v527_v9  ;;  %v2030_v10 = vld [vmem:[%s3105_s0 + $0x8] sm:$0x3] }
 0x213   :  { %v529_v14 = vadd.f32 %v2615_v8, %v528_v13 }
 0x215   :  { %2261 = vmatmul.mubr.msk.f32.vlgmr.msra.gmra.mrb[6].mxu0 %vm47_vm1, %v529_v14  ;;  %2272 = vmatmul.mubr.msk.f32.vlgmr.msra.gmra.mrb[6].mxu1 %vm47_vm1, %v529_v14  ;;  %2011 = vst.msk [vmem:[%s3113_s8 + $0x2] sm:$0x3] %vm289_vm2, %v529_v14 }
 0x216   :  { %2500 = vmatpush3.bf16.msra.mxu0 %v2808_v17  ;;  %2282 = vmatprep.mubr.msk.f32.mxu0 %vm2703_vm0, %v2704_v6 }
 0x217   :  { %2501 = vmatprep.subr.bf16.mxu0 %v2702_v3  ;;  %2506 = vmatpush3.bf16.msra.mxu1 %v2766_v4 }
 0x218   :  { %2507 = vmatprep.subr.bf16.mxu1 %v2702_v3  ;;  %2293 = vmatprep.mubr.msk.f32.mxu1 %vm2703_vm0, %v2704_v6 }
 0x21a   :  { %2503 = vmatpush3.bf16.msra.mxu0 %v2821_v20 }
 0x21b   :  { %2510 = vmatprep.subr.bf16.mxu0 %v2702_v3  ;;  %2509 = vmatpush3.bf16.msra.mxu1 %v2789_v11 }
 0x21c   :  { %2516 = vmatprep.subr.bf16.mxu1 %v2702_v3 }
 0x21d   :  { %2283 = vmatmul.mubr.msk.f32.vlgmr.msra.gmra.mrb[8].mxu0 %vm47_vm1, %v529_v14 }
 0x21e   :  { %2512 = vmatpush3.bf16.msra.mxu0 %v2791_v12  ;;  %2304 = vmatprep.mubr.msk.f32.mxu0 %vm2703_vm0, %v2704_v6 }
 0x21f   :  { %2513 = vmatprep.subr.bf16.mxu0 %v2702_v3 }
 0x222   :  { %2515 = vmatpush3.bf16.msra.mxu0 %v2801_v15 }
 0x223   :  { %2522 = vmatprep.subr.bf16.mxu0 %v2702_v3 }
 0x2e8   :  { %v603_v18 = vpop.f32.mrb[6].mxu0  ;;  %v682_v19 = vpop.f32.mrb[6].mxu1 }
 0x2e9   :  { %v607_v21 = vadd.f32 %v2012_v16, %v603_v18  ;;  %v2262_v22 = vpop.f32.mrb[7].mxu0  ;;  %v2273_v23 = vpop.f32.mrb[7].mxu1  ;;  %v686_v27 = vadd.f32 %v2015_v25, %v682_v19 }
 0x2ea   :  { %v2033_v22 = vld [vmem:[%s3106_s1 + $0x8] sm:$0x3] }
 0x2eb   :  { %v2014_v24 = vmul.f32 -1.442695, %v607_v21  ;;  %v2017_v29 = vmul.f32 -1.442695, %v686_v27 }
 0x2ed   :  { %2618 = vpow2.f32 %v2014_v24 }
 0x2ee   :  { %2620 = vpow2.f32 %v2017_v29 }
 0x2f0   :  { %v761_v26 = vpop.f32.mrb[8].mxu0 }
 0x2f1   :  { %v2284_v28 = vpop.f32.mrb[9].mxu0  ;;  %v762_v33 = vadd.f32 %v2851_v35, %v761_v26 }
 0x2f7   :  { %v2619_v30 = vpop.eup %2618 }
 0x2f8   :  { %v611_v31 = vadd.f32 1.0, %v2619_v30  ;;  %v2621_v32 = vpop.eup %2620 }
 0x2f9   :  { %v690_v38 = vadd.f32 1.0, %v2621_v32  ;;  %v2036_v32 = vld [vmem:[%s3107_s2 + $0x8] sm:$0x3] }
 0x2fa   :  { %2622 = vrcp.f32 %v611_v31 }
 0x304   :  { %v2623_v34 = vpop.eup %2622 }
 0x305   :  { %v765_v37 = vmul.f32 %v2623_v34, %v762_v33 }
 0x307   :  { %v766_v39 = vadd.f32 %v2018_v36, %v765_v37 }
 0x309   :  { %2624 = vtanh.f32 %v766_v39 }
 0x30a   :  { %2626 = vrcp.f32 %v690_v38 }
 0x313   :  { %v2625_v40 = vpop.eup %2624 }
 0x314   :  { %v768_v41 = vsub.f32 %v529_v14, %v2625_v40  ;;  %v2627_v42 = vpop.eup %2626 }
 0x316   :  { %v769_v43 = vmul.f32 %v2627_v42, %v768_v41  ;;  %v2039_v42 = vld [vmem:[%s3105_s0 + $0xa] sm:$0x3] }
 0x318   :  { %v770_v44 = vadd.f32 %v2625_v40, %v769_v43 }
 0x31a   :  { %2294 = vmatmul.mubr.msk.f32.vlgmr.msra.gmra.mrb[8].mxu1 %vm47_vm1, %v770_v44  ;;  %2305 = vmatmul.mubr.msk.f32.vlgmr.msra.gmra.mrb[10].mxu0 %vm47_vm1, %v770_v44  ;;  %2020 = vst.msk [vmem:[%s3113_s8 + $0x4] sm:$0x3] %vm289_vm2, %v770_v44 }
 0x31b   :  { %2518 = vmatpush3.bf16.msra.mxu1 %v2808_v17  ;;  %2315 = vmatprep.mubr.msk.f32.mxu1 %vm2703_vm0, %v2704_v6 }
 0x31c   :  { %2519 = vmatprep.subr.bf16.mxu1 %v2702_v3  ;;  %2524 = vmatpush3.bf16.msra.mxu0 %v2766_v4 }
 0x31d   :  { %2525 = vmatprep.subr.bf16.mxu0 %v2702_v3  ;;  %2326 = vmatprep.mubr.msk.f32.mxu0 %vm2703_vm0, %v2704_v6 }
 0x31f   :  { %2521 = vmatpush3.bf16.msra.mxu1 %v2821_v20 }
 0x320   :  { %2528 = vmatprep.subr.bf16.mxu1 %v2702_v3  ;;  %2527 = vmatpush3.bf16.msra.mxu0 %v2789_v11 }
 0x321   :  { %2534 = vmatprep.subr.bf16.mxu0 %v2702_v3 }
 0x322   :  { %2316 = vmatmul.mubr.msk.f32.vlgmr.msra.gmra.mrb[10].mxu1 %vm47_vm1, %v770_v44 }
 0x323   :  { %2530 = vmatpush3.bf16.msra.mxu1 %v2791_v12  ;;  %2337 = vmatprep.mubr.msk.f32.mxu1 %vm2703_vm0, %v2704_v6 }
 0x324   :  { %2531 = vmatprep.subr.bf16.mxu1 %v2702_v3 }
 0x327   :  { %2533 = vmatpush3.bf16.msra.mxu1 %v2801_v15 }
 0x328   :  { %2540 = vmatprep.subr.bf16.mxu1 %v2702_v3 }
 0x3ed   :  { %v844_v46 = vpop.f32.mrb[8].mxu1  ;;  %v923_v47 = vpop.f32.mrb[10].mxu0 }
 0x3ee   :  { %v848_v48 = vadd.f32 %v2021_v45, %v844_v46  ;;  %v2295_v49 = vpop.f32.mrb[9].mxu1  ;;  %v2306_v50 = vpop.f32.mrb[11].mxu0  ;;  %v927_v54 = vadd.f32 %v2024_v52, %v923_v47 }
 0x3ef   :  { %v2042_v49 = vld [vmem:[%s3106_s1 + $0xa] sm:$0x3] }
 0x3f0   :  { %v2023_v51 = vmul.f32 -1.442695, %v848_v48  ;;  %v2026_v56 = vmul.f32 -1.442695, %v927_v54 }
 0x3f2   :  { %2628 = vpow2.f32 %v2023_v51 }
 0x3f3   :  { %2630 = vpow2.f32 %v2026_v56 }
 0x3f5   :  { %v1002_v53 = vpop.f32.mrb[10].mxu1 }
 0x3f6   :  { %v2317_v55 = vpop.f32.mrb[11].mxu1  ;;  %v1003_v60 = vadd.f32 %v2851_v35, %v1002_v53 }
 0x3fc   :  { %v2629_v57 = vpop.eup %2628 }
 0x3fd   :  { %v852_v58 = vadd.f32 1.0, %v2629_v57  ;;  %v2631_v59 = vpop.eup %2630 }
 0x3fe   :  { %v931_v0 = vadd.f32 1.0, %v2631_v59  ;;  %v2045_v59 = vld [vmem:[%s3107_s2 + $0xa] sm:$0x3] }
 0x3ff   :  { %2632 = vrcp.f32 %v852_v58 }
 0x409   :  { %v2633_v61 = vpop.eup %2632 }
 0x40a   :  { %v1006_v63 = vmul.f32 %v2633_v61, %v1003_v60 }
 0x40c   :  { %v1007_v1 = vadd.f32 %v2027_v62, %v1006_v63 }
 0x40e   :  { %2634 = vtanh.f32 %v1007_v1 }
 0x40f   :  { %2636 = vrcp.f32 %v931_v0 }
 0x418   :  { %v2635_v2 = vpop.eup %2634 }
 0x419   :  { %v1009_v5 = vsub.f32 %v770_v44, %v2635_v2  ;;  %v2637_v7 = vpop.eup %2636 }
 0x41b   :  { %v1010_v8 = vmul.f32 %v2637_v7, %v1009_v5 }
 0x41d   :  { %v1011_v9 = vadd.f32 %v2635_v2, %v1010_v8 }
 0x41f   :  { %2327 = vmatmul.mubr.msk.f32.vlgmr.msra.gmra.mrb[12].mxu0 %vm47_vm1, %v1011_v9  ;;  %2338 = vmatmul.mubr.msk.f32.vlgmr.msra.gmra.mrb[12].mxu1 %vm47_vm1, %v1011_v9  ;;  %2029 = vst.msk [vmem:[%s3113_s8 + $0x6] sm:$0x3] %vm289_vm2, %v1011_v9 }
 0x420   :  { %2536 = vmatpush3.bf16.msra.mxu0 %v2808_v17  ;;  %2348 = vmatprep.mubr.msk.f32.mxu0 %vm2703_vm0, %v2704_v6 }
 0x421   :  { %2537 = vmatprep.subr.bf16.mxu0 %v2702_v3  ;;  %2542 = vmatpush3.bf16.msra.mxu1 %v2766_v4 }
 0x422   :  { %2543 = vmatprep.subr.bf16.mxu1 %v2702_v3  ;;  %2359 = vmatprep.mubr.msk.f32.mxu1 %vm2703_vm0, %v2704_v6 }
 0x424   :  { %2539 = vmatpush3.bf16.msra.mxu0 %v2821_v20 }
 0x425   :  { %2546 = vmatprep.subr.bf16.mxu0 %v2702_v3  ;;  %2545 = vmatpush3.bf16.msra.mxu1 %v2789_v11 }
 0x426   :  { %2552 = vmatprep.subr.bf16.mxu1 %v2702_v3 }
 0x427   :  { %2349 = vmatmul.mubr.msk.f32.vlgmr.msra.gmra.mrb[14].mxu0 %vm47_vm1, %v1011_v9 }
 0x428   :  { %2548 = vmatpush3.bf16.msra.mxu0 %v2791_v12  ;;  %2370 = vmatprep.mubr.msk.f32.mxu0 %vm2703_vm0, %v2704_v6 }
 0x429   :  { %2549 = vmatprep.subr.bf16.mxu0 %v2702_v3 }
 0x42c   :  { %2551 = vmatpush3.bf16.msra.mxu0 %v2801_v15 }
 0x42d   :  { %2558 = vmatprep.subr.bf16.mxu0 %v2702_v3 }
 0x4f2   :  { %v1085_v13 = vpop.f32.mrb[12].mxu0  ;;  %v1164_v14 = vpop.f32.mrb[12].mxu1 }
 0x4f3   :  { %v1089_v16 = vadd.f32 %v2030_v10, %v1085_v13  ;;  %v2328_v18 = vpop.f32.mrb[13].mxu0  ;;  %v2339_v19 = vpop.f32.mrb[13].mxu1  ;;  %v1168_v24 = vadd.f32 %v2033_v22, %v1164_v14 }
 0x4f5   :  { %v2032_v21 = vmul.f32 -1.442695, %v1089_v16  ;;  %v2035_v26 = vmul.f32 -1.442695, %v1168_v24 }
 0x4f7   :  { %2638 = vpow2.f32 %v2032_v21 }
 0x4f8   :  { %2640 = vpow2.f32 %v2035_v26 }
 0x4fa   :  { %v1243_v23 = vpop.f32.mrb[14].mxu0 }
 0x4fb   :  { %v2350_v25 = vpop.f32.mrb[15].mxu0  ;;  %v1244_v30 = vadd.f32 %v2851_v35, %v1243_v23 }
 0x4fc   :  { %v2054_v25 = vld [vmem:[%s3107_s2 + $0xc] sm:$0x3] }
 0x501   :  { %v2639_v27 = vpop.eup %2638 }
 0x502   :  { %v1093_v28 = vadd.f32 1.0, %v2639_v27  ;;  %v2641_v29 = vpop.eup %2640 }
 0x503   :  { %v1172_v34 = vadd.f32 1.0, %v2641_v29 }
 0x504   :  { %2642 = vrcp.f32 %v1093_v28 }
 0x50e   :  { %v2643_v31 = vpop.eup %2642 }
 0x50f   :  { %v1247_v33 = vmul.f32 %v2643_v31, %v1244_v30 }
 0x511   :  { %v1248_v36 = vadd.f32 %v2036_v32, %v1247_v33 }
 0x513   :  { %2644 = vtanh.f32 %v1248_v36 }
 0x514   :  { %2646 = vrcp.f32 %v1172_v34  ;;  %v2057_v34 = vld [vmem:[%s3105_s0 + $0xe] sm:$0x3] }
 0x51d   :  { %v2645_v37 = vpop.eup %2644 }
 0x51e   :  { %v1250_v38 = vsub.f32 %v1011_v9, %v2645_v37  ;;  %v2647_v39 = vpop.eup %2646 }
 0x520   :  { %v1251_v40 = vmul.f32 %v2647_v39, %v1250_v38 }
 0x522   :  { %v1252_v41 = vadd.f32 %v2645_v37, %v1251_v40 }
 0x524   :  { %2360 = vmatmul.mubr.msk.f32.vlgmr.msra.gmra.mrb[14].mxu1 %vm47_vm1, %v1252_v41  ;;  %2371 = vmatmul.mubr.msk.f32.vlgmr.msra.gmra.mrb[16].mxu0 %vm47_vm1, %v1252_v41  ;;  %2038 = vst.msk [vmem:[%s3113_s8 + $0x8] sm:$0x3] %vm289_vm2, %v1252_v41 }
 0x525   :  { %2554 = vmatpush3.bf16.msra.mxu1 %v2808_v17  ;;  %2381 = vmatprep.mubr.msk.f32.mxu1 %vm2703_vm0, %v2704_v6 }
 0x526   :  { %2555 = vmatprep.subr.bf16.mxu1 %v2702_v3  ;;  %2560 = vmatpush3.bf16.msra.mxu0 %v2766_v4 }
 0x527   :  { %2561 = vmatprep.subr.bf16.mxu0 %v2702_v3  ;;  %2392 = vmatprep.mubr.msk.f32.mxu0 %vm2703_vm0, %v2704_v6 }
 0x529   :  { %2557 = vmatpush3.bf16.msra.mxu1 %v2821_v20 }
 0x52a   :  { %2564 = vmatprep.subr.bf16.mxu1 %v2702_v3  ;;  %2563 = vmatpush3.bf16.msra.mxu0 %v2789_v11 }
 0x52b   :  { %2570 = vmatprep.subr.bf16.mxu0 %v2702_v3 }
 0x52c   :  { %2382 = vmatmul.mubr.msk.f32.vlgmr.msra.gmra.mrb[16].mxu1 %vm47_vm1, %v1252_v41 }
 0x52d   :  { %2566 = vmatpush3.bf16.msra.mxu1 %v2791_v12  ;;  %2403 = vmatprep.mubr.msk.f32.mxu1 %vm2703_vm0, %v2704_v6 }
 0x52e   :  { %2567 = vmatprep.subr.bf16.mxu1 %v2702_v3 }
 0x531   :  { %2569 = vmatpush3.bf16.msra.mxu1 %v2801_v15 }
 0x532   :  { %2576 = vmatprep.subr.bf16.mxu1 %v2702_v3 }
 0x5f7   :  { %v1326_v43 = vpop.f32.mrb[14].mxu1  ;;  %v1405_v44 = vpop.f32.mrb[16].mxu0 }
 0x5f8   :  { %v1330_v45 = vadd.f32 %v2039_v42, %v1326_v43  ;;  %v2361_v46 = vpop.f32.mrb[15].mxu1  ;;  %v2372_v47 = vpop.f32.mrb[17].mxu0  ;;  %v1409_v51 = vadd.f32 %v2042_v49, %v1405_v44 }
 0x5fa   :  { %v2041_v48 = vmul.f32 -1.442695, %v1330_v45  ;;  %v2044_v53 = vmul.f32 -1.442695, %v1409_v51 }
 0x5fc   :  { %2648 = vpow2.f32 %v2041_v48  ;;  %v2063_v48 = vld [vmem:[%s3107_s2 + $0xe] sm:$0x3] }
 0x5fd   :  { %2650 = vpow2.f32 %v2044_v53 }
 0x5ff   :  { %v1484_v50 = vpop.f32.mrb[16].mxu1 }
 0x600   :  { %v2383_v52 = vpop.f32.mrb[17].mxu1  ;;  %v1485_v57 = vadd.f32 %v2851_v35, %v1484_v50 }
 0x606   :  { %v2649_v54 = vpop.eup %2648 }
 0x607   :  { %v1334_v55 = vadd.f32 1.0, %v2649_v54  ;;  %v2651_v56 = vpop.eup %2650 }
 0x608   :  { %v1413_v61 = vadd.f32 1.0, %v2651_v56 }
 0x609   :  { %2652 = vrcp.f32 %v1334_v55 }
 0x613   :  { %v2653_v58 = vpop.eup %2652 }
 0x614   :  { %v1488_v60 = vmul.f32 %v2653_v58, %v1485_v57 }
 0x616   :  { %v1489_v62 = vadd.f32 %v2045_v59, %v1488_v60 }
 0x618   :  { %2654 = vtanh.f32 %v1489_v62 }
 0x619   :  { %2656 = vrcp.f32 %v1413_v61 }
 0x622   :  { %v2655_v63 = vpop.eup %2654 }
 0x623   :  { %v1491_v0 = vsub.f32 %v1252_v41, %v2655_v63  ;;  %v2657_v1 = vpop.eup %2656 }
 0x625   :  { %v1492_v2 = vmul.f32 %v2657_v1, %v1491_v0 }
 0x627   :  { %v1493_v5 = vadd.f32 %v2655_v63, %v1492_v2 }
 0x629   :  { %2393 = vmatmul.mubr.msk.f32.vlgmr.msra.gmra.mrb[18].mxu0 %vm47_vm1, %v1493_v5  ;;  %2404 = vmatmul.mubr.msk.f32.vlgmr.msra.gmra.mrb[18].mxu1 %vm47_vm1, %v1493_v5  ;;  %2047 = vst.msk [vmem:[%s3113_s8 + $0xa] sm:$0x3] %vm289_vm2, %v1493_v5 }
 0x62a   :  { %2572 = vmatpush3.bf16.msra.mxu0 %v2808_v17  ;;  %2414 = vmatprep.mubr.msk.f32.mxu0 %vm2703_vm0, %v2704_v6 }
 0x62b   :  { %2573 = vmatprep.subr.bf16.mxu0 %v2702_v3  ;;  %2578 = vmatpush3.bf16.msra.mxu1 %v2766_v4  ;;  %v2048_v4 = vld [vmem:[%s3105_s0 + $0xc] sm:$0x3] }
 0x62c   :  { %2579 = vmatprep.subr.bf16.mxu1 %v2702_v3  ;;  %2425 = vmatprep.mubr.msk.f32.mxu1 %vm2703_vm0, %v2704_v6 }
 0x62e   :  { %2575 = vmatpush3.bf16.msra.mxu0 %v2821_v20 }
 0x62f   :  { %2582 = vmatprep.subr.bf16.mxu0 %v2702_v3  ;;  %2581 = vmatpush3.bf16.msra.mxu1 %v2789_v11 }
 0x630   :  { %2588 = vmatprep.subr.bf16.mxu1 %v2702_v3 }
 0x631   :  { %2415 = vmatmul.mubr.msk.f32.vlgmr.msra.gmra.mrb[20].mxu0 %vm47_vm1, %v1493_v5 }
 0x632   :  { %2584 = vmatpush3.bf16.msra.mxu0 %v2791_v12  ;;  %2436 = vmatprep.mubr.msk.f32.mxu0 %vm2703_vm0, %v2704_v6  ;;  %v2051_v12 = vld [vmem:[%s3106_s1 + $0xc] sm:$0x3] }
 0x633   :  { %2585 = vmatprep.subr.bf16.mxu0 %v2702_v3 }
 0x636   :  { %2587 = vmatpush3.bf16.msra.mxu0 %v2801_v15 }
 0x6fc   :  { %v1567_v7 = vpop.f32.mrb[18].mxu0  ;;  %v1646_v8 = vpop.f32.mrb[18].mxu1 }
 0x6fd   :  { %v1571_v11 = vadd.f32 %v2048_v4, %v1567_v7  ;;  %v2394_v9 = vpop.f32.mrb[19].mxu0  ;;  %v2405_v10 = vpop.f32.mrb[19].mxu1  ;;  %v1650_v16 = vadd.f32 %v2051_v12, %v1646_v8 }
 0x6ff   :  { %v2050_v13 = vmul.f32 -1.442695, %v1571_v11  ;;  %v2053_v19 = vmul.f32 -1.442695, %v1650_v16 }
 0x701   :  { %2658 = vpow2.f32 %v2050_v13 }
 0x702   :  { %2660 = vpow2.f32 %v2053_v19 }
 0x704   :  { %v1725_v14 = vpop.f32.mrb[20].mxu0 }
 0x705   :  { %v2416_v18 = vpop.f32.mrb[21].mxu0  ;;  %v1726_v23 = vadd.f32 %v2851_v35, %v1725_v14 }
 0x70b   :  { %v2659_v15 = vpop.eup %2658 }
 0x70c   :  { %v1575_v21 = vadd.f32 1.0, %v2659_v15  ;;  %v2661_v22 = vpop.eup %2660 }
 0x70d   :  { %v1654_v27 = vadd.f32 1.0, %v2661_v22 }
 0x70e   :  { %2662 = vrcp.f32 %v1575_v21 }
 0x718   :  { %v2663_v24 = vpop.eup %2662 }
 0x719   :  { %v1729_v26 = vmul.f32 %v2663_v24, %v1726_v23 }
 0x71b   :  { %v1730_v28 = vadd.f32 %v2054_v25, %v1729_v26 }
 0x71d   :  { %2664 = vtanh.f32 %v1730_v28 }
 0x71e   :  { %2666 = vrcp.f32 %v1654_v27 }
 0x727   :  { %v2665_v29 = vpop.eup %2664 }
 0x728   :  { %v1732_v30 = vsub.f32 %v1493_v5, %v2665_v29  ;;  %v2667_v31 = vpop.eup %2666 }
 0x72a   :  { %v1733_v32 = vmul.f32 %v2667_v31, %v1732_v30 }
 0x72c   :  { %v1734_v33 = vadd.f32 %v2665_v29, %v1733_v32 }
 0x72e   :  { %2426 = vmatmul.mubr.msk.f32.vlgmr.msra.gmra.mrb[20].mxu1 %vm47_vm1, %v1734_v33  ;;  %2437 = vmatmul.mubr.msk.f32.vlgmr.msra.gmra.mrb[22].mxu0 %vm47_vm1, %v1734_v33  ;;  %2056 = vst.msk [vmem:[%s3113_s8 + $0xc] sm:$0x3] %vm289_vm2, %v1734_v33 }
 0x72f   :  { %2590 = vmatpush3.bf16.msra.mxu1 %v2808_v17  ;;  %2447 = vmatprep.mubr.msk.f32.mxu1 %vm2703_vm0, %v2704_v6  ;;  %v2060_v6 = vld [vmem:[%s3106_s1 + $0xe] sm:$0x3]  ;;  %s2705_s1 = smov [#allocation2]  }
 0x730   :  { %2591 = vmatprep.subr.bf16.mxu1 %v2702_v3  ;;  %s1987_s20 = sshll.u32 %s2705_s1, 4  ;;  %s1988_s20 = int_to_ptr.vmem [resolvable:$true] %s1987_s20 }
 0x731   :  { %s2678_s2 = scalar_lea.vmem %s1988_s20, 32  ;;  %p2683_p1 = scmp.lt.s32.totalorder %s1988_s20, %s1988_s20 }
 0x732   :  { %p2679_p0 = scmp.ne.s32.totalorder %s1988_s20, %s2678_s2  ;;  %p2684_p2 = scmp.lt.s32.totalorder %s2678_s2, %s2678_s2 }
 0x733   :  { %2593 = vmatpush3.bf16.msra.mxu1 %v2821_v20 }
 0x734   :  { %p2685_p3 = por %p2684_p2, %p2683_p1 }
 0x736   :  { %2448 = vmatmul.mubr.msk.f32.vlgmr.msra.gmra.mrb[22].mxu1 %vm47_vm1, %v1734_v33  ;;  %p2686_p4 = pnand %p2685_p3, %p2679_p0 }
 0x801   :  { %v1808_v36 = vpop.f32.mrb[20].mxu1  ;;  %v1887_v37 = vpop.f32.mrb[22].mxu0 }
 0x802   :  { %v1812_v38 = vadd.f32 %v2057_v34, %v1808_v36  ;;  %v2427_v39 = vpop.f32.mrb[21].mxu1  ;;  %v2438_v40 = vpop.f32.mrb[23].mxu0  ;;  %v1891_v17 = vadd.f32 %v2060_v6, %v1887_v37 }
 0x804   :  { %v2059_v41 = vmul.f32 -1.442695, %v1812_v38  ;;  %v2062_v42 = vmul.f32 -1.442695, %v1891_v17 }
 0x806   :  { %2668 = vpow2.f32 %v2059_v41 }
 0x807   :  { %2670 = vpow2.f32 %v2062_v42 }
 0x809   :  { %v1966_v3 = vpop.f32.mrb[22].mxu1 }
 0x80a   :  { %v2449_v20 = vpop.f32.mrb[23].mxu1  ;;  %v1967_v46 = vadd.f32 %v2851_v35, %v1966_v3 }
 0x810   :  { %v2669_v43 = vpop.eup %2668 }
 0x811   :  { %v1816_v44 = vadd.f32 1.0, %v2669_v43  ;;  %v2671_v45 = vpop.eup %2670 }
 0x812   :  { %v1895_v50 = vadd.f32 1.0, %v2671_v45 }
 0x813   :  { %2672 = vrcp.f32 %v1816_v44 }
 0x81d   :  { %v2673_v47 = vpop.eup %2672 }
 0x81e   :  { %v1970_v49 = vmul.f32 %v2673_v47, %v1967_v46 }
 0x820   :  { %v1971_v51 = vadd.f32 %v2063_v48, %v1970_v49 }
 0x822   :  { %2674 = vtanh.f32 %v1971_v51 }
 0x823   :  { %2676 = vrcp.f32 %v1895_v50 }
 0x82c   :  { %v2675_v52 = vpop.eup %2674 }
 0x82d   :  { %v1973_v53 = vsub.f32 %v1734_v33, %v2675_v52  ;;  %v2677_v54 = vpop.eup %2676 }
 0x82f   :  { %v1974_v55 = vmul.f32 %v2677_v54, %v1973_v53 }
 0x831   :  { %v1975_v56 = vadd.f32 %v2675_v52, %v1974_v55 }
 0x833   :  { %2065 = vst.msk [vmem:[%s3113_s8 + $0xe] sm:$0x3] %vm289_vm2, %v1975_v56  ;;  %1978 = vst.msk [vmem:[#allocation2] sm:$0x3] %vm289_vm2, %v1975_v56 }
 0x834   :  { %2689 = shalt.err (!%p2686_p4)
}
 0x835   :  { %s2690_s24 = scalar_lea.hbm %s3114_s9, 32 }
 0x836   :  { %p2691_p5 = scmp.ne.s32.totalorder %s3114_s9, %s2690_s24  ;;  %p2694_p6 = scmp.lt.u32.totalorder %s2690_s24, %s3114_s9 }
 0x838   :  { %p2696_p7 = pnand %p2694_p6, %p2691_p5 }
 0x83a   :  { %2699 = shalt.err (!%p2696_p7)
}
 0x83b   :  { %1990 = dma.vmem_to_hbm [thread:$0]  %s1988_s20, 32, %s3114_s9, [#allocation3]  }
 0x83c   :  { %2700 = dma.done.wait [#allocation3], 32  }
 0x83d   :  { %2701 = vsyncadd [#allocation3], 4294967264 }
 0x83e   :  { %1996 = vsyncpa [#allocation3], 1 }

</bundles_post_ra>
